<compile_context>
chip_gen: v7x
topology: tpu7x:2x2x1
jax: 0.10.0
libtpu: 0.0.40
codegen_flags: <defaults>
</compile_context>

<pallas_src>
import math

import jax
import jax.numpy as jnp
from jax.experimental import pallas as pl
from jax.experimental.pallas import tpu as pltpu

# ---------------- small synthetic configuration ----------------
BS = 2                 # batch
SEQ = 8                # number of visits
CODES_PER_VISIT = 4    # medical codes per visit
VOCAB = 20             # EHR code vocabulary
D_MODEL = 32           # d_model
N_HEADS = 4            # target_att_heads
D_HEAD = D_MODEL // N_HEADS
BLK_VOCAB = 50         # rows of the frozen text-block embedding table
BLK_DIM = 768          # text-block embedding width
NUM_DISEASE = 5        # target disease vectors
NUM_BLK = 6            # text blocks per visit
MEM_SIZE = 4
MEM_UPDATE_SIZE = 3
LN_EPS = 1e-5

TAB_ROWS = 64          # padded rows of the kernel table: [tdv(5); pad(3); blk_emb(50); pad(6)]
BLK_OFF = 8            # text-block rows start here (keeps the tdv slice 8-aligned)
R = BS * SEQ           # flattened (batch, visit) rows


# ================= fused Pallas kernel =================

def _fused_kernel(x_ref, w1_ref, w2_ref, small_ref, wpack_ref,
                  vall_ref, onehot_ref, mask_ref,
                  seq_out_ref, tab_out_ref):
    f32 = jnp.float32
    small = small_ref[...]
    wpack = wpack_ref[...]

    # ---- packed small row-vectors ----
    b1_blk = small[0:1, :]                              # blk_trans Linear1 bias (1, 64)
    b2_blk = small[1:2, 0:D_MODEL]
    gamma = small[1:2, D_MODEL:2 * D_MODEL]
    beta = small[2:3, 0:D_MODEL]
    bq = small[2:3, D_MODEL:2 * D_MODEL]
    bkv = small[3:4, :]                                 # [bk | bv]
    bo = small[4:5, 0:D_MODEL]
    b1_att = small[4:5, D_MODEL:2 * D_MODEL]
    w2_row = small[5:6, 0:D_MODEL]                      # att_mlp Linear(D,1,bias=False) as a row
    key_msk = small[6:7, 0:BLK_OFF]                     # 0 for the 5 real keys, -1e30 for pads

    # ---- blk_trans over the whole 64-row table (bf16 MXU inputs, f32 accum / LayerNorm) ----
    h = jnp.maximum(
        jnp.dot(x_ref[...], w1_ref[...], preferred_element_type=f32) + b1_blk, 0.0)
    y = jnp.dot(h, w2_ref[...], preferred_element_type=f32) + b2_blk
    mu = jnp.mean(y, axis=-1, keepdims=True)
    var = jnp.mean((y - mu) * (y - mu), axis=-1, keepdims=True)
    y_ln = (y - mu) * jax.lax.rsqrt(var + LN_EPS) * gamma + beta           # (64, D)

    # ---- [MemoryUpdate.linear_k | att_mlp.w1b] applied to the whole table in one GEMM ----
    post = jnp.dot(y_ln, wpack[:, 6 * D_MODEL:8 * D_MODEL],
                   preferred_element_type=f32)                             # (64, 2D)
    tab_out_ref[:, 0:D_MODEL] = y_ln
    tab_out_ref[:, D_MODEL:2 * D_MODEL] = post[:, 0:D_MODEL]
    w1b_tab = post[:, D_MODEL:2 * D_MODEL]                                 # (64, D)

    # ---- target-disease multi-head attention over flattened (BS*SEQ, D) queries ----
    # TODO(synk): the Attention class source was not provided; assumed standard multi-head
    # scaled-dot-product attention with in/out projections (same assumption as before).
    vall = vall_ref[...]                                                   # (R, D)
    q = jnp.dot(vall, wpack[:, 0:D_MODEL], preferred_element_type=f32) + bq
    kv = jnp.dot(y_ln[0:BLK_OFF, :], wpack[:, D_MODEL:3 * D_MODEL],
                 preferred_element_type=f32) + bkv                         # (8, 2D): [k | v]
    k, v = kv[:, 0:D_MODEL], kv[:, D_MODEL:2 * D_MODEL]
    inv_scale = 1.0 / math.sqrt(D_HEAD)
    heads = []
    for hh in range(N_HEADS):
        sl = slice(hh * D_HEAD, (hh + 1) * D_HEAD)
        s = jax.lax.dot_general(q[:, sl], k[:, sl], (((1,), (1,)), ((), ())),
                                preferred_element_type=f32) * inv_scale    # (R, 8)
        p = jax.nn.softmax(s + key_msk, axis=-1)                           # pads -> weight 0
        heads.append(jnp.dot(p, v[:, sl], preferred_element_type=f32))     # (R, 8)
    ctx = jnp.concatenate(heads, axis=-1)                                  # (R, D)
    transformed = jnp.dot(ctx, wpack[:, 3 * D_MODEL:4 * D_MODEL],
                          preferred_element_type=f32) + bo                 # (R, D)

    # ---- MemoryUpdate.linear_q applied to (transformed + v_all) ----
    q_mem = jnp.dot(transformed + vall, wpack[:, 4 * D_MODEL:5 * D_MODEL],
                    preferred_element_type=f32)                            # (R, D)

    # ---- att_mlp: one-hot gather GEMM per block + tanh + Linear(D,1) + softmax + mask ----
    tv_b = jnp.dot(transformed, wpack[:, 5 * D_MODEL:6 * D_MODEL],
                   preferred_element_type=f32) + b1_att                    # (R, D), computed once
    logits = jnp.zeros((R, NUM_BLK), f32)
    col = jax.lax.broadcasted_iota(jnp.int32, (1, NUM_BLK), 1)
    for nb in range(NUM_BLK):
        oh = onehot_ref[:, nb * TAB_ROWS:(nb + 1) * TAB_ROWS]              # (R, 64)
        vt = jnp.dot(oh, w1b_tab, preferred_element_type=f32)              # gather + w1b in one GEMM
        act = jnp.tanh(vt + tv_b)
        lg = jnp.sum(act * w2_row, axis=-1, keepdims=True)                 # (R, 1)
        logits = logits + lg * (col == nb).astype(f32)
    att = jax.nn.softmax(logits, axis=-1)
    att = jnp.where(mask_ref[...] == 0, 0.0, att)                          # mask AFTER softmax

    # ---- single lane-dense (R, 128) output slab ----
    seq_out_ref[...] = jnp.zeros(seq_out_ref.shape, f32)
    seq_out_ref[:, 0:D_MODEL] = transformed
    seq_out_ref[:, D_MODEL:2 * D_MODEL] = q_mem
    seq_out_ref[:, 2 * D_MODEL:2 * D_MODEL + NUM_BLK] = att


def _fused_call(kp, v_all_flat, onehot, mask_flat):
    full = lambda i: (0, 0)
    return pl.pallas_call(
        _fused_kernel,
        out_shape=(jax.ShapeDtypeStruct((R, 128), jnp.float32),
                   jax.ShapeDtypeStruct((TAB_ROWS, 2 * D_MODEL), jnp.float32)),
        grid=(1,),
        in_specs=[
            pl.BlockSpec((TAB_ROWS, BLK_DIM), full),          # big_x (bf16)
            pl.BlockSpec((BLK_DIM, 2 * D_MODEL), full),       # blk_trans w1 (bf16)
            pl.BlockSpec((2 * D_MODEL, D_MODEL), full),       # blk_trans w2
            pl.BlockSpec((8, 2 * D_MODEL), full),             # packed small row-vectors
            pl.BlockSpec((D_MODEL, 8 * D_MODEL), full),       # packed (32,256) weights
            pl.BlockSpec((R, D_MODEL), full),                 # v_all (flattened)
            pl.BlockSpec((R, NUM_BLK * TAB_ROWS), full),      # one-hot text-block indices
            pl.BlockSpec((R, NUM_BLK), full),                 # masks_txt
        ],
        out_specs=(pl.BlockSpec((R, 128), full),
                   pl.BlockSpec((TAB_ROWS, 2 * D_MODEL), full)),
        compiler_params=pltpu.CompilerParams(dimension_semantics=("arbitrary",)),
    )(kp["big_x"], kp["w1"], kp["w2"], kp["small"], kp["wpack"],
      v_all_flat, onehot, mask_flat)


# ================= plain-JAX glue =================

def _lstm(x, p):
    """Single-layer LSTM, batch_first. x: [bs, T, in] -> hidden states [bs, T, H]."""
    bs = x.shape[0]
    H = p["whh"].shape[1]

    def step(carry, xt):
        h, c = carry
        gates = xt @ p["wih"].T + p["bih"] + h @ p["whh"].T + p["bhh"]
        i, f, g, o = jnp.split(gates, 4, axis=-1)
        c = jax.nn.sigmoid(f) * c + jax.nn.sigmoid(i) * jnp.tanh(g)
        h = jax.nn.sigmoid(o) * jnp.tanh(c)
        return (h, c), h

    init = (jnp.zeros((bs, H), jnp.float32), jnp.zeros((bs, H), jnp.float32))
    _, hs = jax.lax.scan(step, init, jnp.swapaxes(x, 0, 1))
    return jnp.swapaxes(hs, 0, 1)


def retain_ex(p, input_seqs, time_step):
    # TODO(synk): the RetainEx class source was not provided; this is a faithful
    # RETAIN-EX-style encoder (code-embedding sum + time features + dual LSTM
    # alpha/beta attention), kept in plain JAX since only v_all feeds the kernel.
    v = p["emb1"][input_seqs].sum(axis=2)                                   # [bs, seq, D]
    t = time_step[..., None].astype(jnp.float32)
    feats = jnp.concatenate([v, t, 1.0 / (t + 1.0), 1.0 / jnp.log(jnp.e + t)], axis=-1)
    h = _lstm(feats, p["lstm1"])
    g = _lstm(feats, p["lstm2"])
    alpha = jax.nn.softmax(g @ p["wa"], axis=1)                             # [bs, seq, 1]
    beta = jnp.tanh(h @ p["wb"])                                            # [bs, seq, D]
    v_all = alpha * beta * v
    encoder_vec = v_all.sum(axis=1) @ p["w_out"]
    return encoder_vec, v_all


def max_pool(x, lengths=None):
    """MaxPoolLayer: max over the sequence axis, masking padded positions with -inf."""
    if lengths is not None:
        mask = jnp.arange(x.shape[1])[None, :] >= lengths[:, None]
        x = jnp.where(mask[..., None], -jnp.inf, x)
    return jnp.max(x, axis=1)


@jax.jit
def text_decoder_forward(params, input_seqs, masks_ehr, input_txt, masks_txt,
                         lengths, time_step, code_mask):
    del masks_ehr, code_mask  # unused in the reference forward
    kp = params["kernel"]

    # 1) EHR encoder (plain JAX, feeds the fused kernel)
    _, v_all = retain_ex(params["retain"], input_seqs, time_step)           # [BS,SEQ,D]

    # 2) ONE fused Pallas kernel: blk_trans table + mem_k/w1b projections +
    #    target-disease attention + mem-query projection + att_mlp scores (softmax + mask).
    v_all_flat = v_all.reshape(R, D_MODEL)
    onehot = jax.nn.one_hot(input_txt.reshape(R, NUM_BLK) + BLK_OFF, TAB_ROWS,
                            dtype=jnp.float32).reshape(R, NUM_BLK * TAB_ROWS)
    mask_flat = masks_txt.reshape(R, NUM_BLK).astype(jnp.int32)
    seq_out, tab_out = _fused_call(kp, v_all_flat, onehot, mask_flat)

    transformed_v_all = seq_out[:, 0:D_MODEL].reshape(BS, SEQ, D_MODEL)
    q_all = seq_out[:, D_MODEL:2 * D_MODEL].reshape(BS, SEQ, D_MODEL)
    att_score = seq_out[:, 2 * D_MODEL:2 * D_MODEL + NUM_BLK].reshape(BS, SEQ, NUM_BLK)
    blk_table = tab_out[BLK_OFF:BLK_OFF + BLK_VOCAB, 0:D_MODEL]             # [50, D]
    mem_k_table = tab_out[BLK_OFF:BLK_OFF + BLK_VOCAB, D_MODEL:2 * D_MODEL] # [50, D]

    # 3) top-k text-block selection (data-dependent, plain JAX)
    _, indices = jax.lax.top_k(att_score, MEM_UPDATE_SIZE)                  # [BS,SEQ,K]
    selected_txt_ids = jnp.take_along_axis(input_txt, indices, axis=2)
    selected_masks = jnp.take_along_axis(masks_txt, indices, axis=2)

    # 4) memory update as a lax.scan with fixed width MEM_SIZE + MEM_UPDATE_SIZE = 7.
    #    Visit 0 takes the reference bypass (width 3 <= mem_size); the carry is padded with
    #    one slot whose post-softmax attention is forced to -1 so it is never selected,
    #    which reproduces the reference's variable-width iteration exactly (indices only).
    inv_scale_mem = 1.0 / math.sqrt(D_MODEL)
    n_pad = MEM_SIZE - MEM_UPDATE_SIZE
    carry_ids = jnp.concatenate(
        [selected_txt_ids[:, 0], jnp.zeros((BS, n_pad), selected_txt_ids.dtype)], axis=1)
    carry_mask = jnp.concatenate(
        [selected_masks[:, 0], jnp.zeros((BS, n_pad), selected_masks.dtype)], axis=1)
    carry_pad = jnp.concatenate(
        [jnp.zeros((BS, MEM_UPDATE_SIZE), jnp.float32), jnp.ones((BS, n_pad), jnp.float32)],
        axis=1)

    def mem_step(carry, xs):
        ids_c, mask_c, pad_c = carry
        sel_ids, sel_mask, q_i = xs
        ids_in = jnp.concatenate([ids_c, sel_ids], axis=1)                  # [BS, 7]
        mask_in = jnp.concatenate([mask_c, sel_mask], axis=1)
        pad_in = jnp.concatenate([pad_c, jnp.zeros_like(sel_mask, dtype=jnp.float32)], axis=1)
        k = mem_k_table[ids_in]                                             # [BS, 7, D]
        energy = jnp.einsum('bd,bld->bl', q_i, k) * inv_scale_mem
        att_m = jax.nn.softmax(energy, axis=-1)
        att_m = jnp.where(mask_in == 0, 0.0, att_m)                         # mask AFTER softmax
        att_m = jnp.where(pad_in > 0, -1.0, att_m)                          # pad slot never wins
        _, idx = jax.lax.top_k(att_m, MEM_SIZE)
        out = (jnp.take_along_axis(ids_in, idx, axis=1),
               jnp.take_along_axis(mask_in, idx, axis=1),
               jnp.take_along_axis(pad_in, idx, axis=1))
        return out, out[0]

    xs = (jnp.swapaxes(selected_txt_ids[:, 1:], 0, 1),
          jnp.swapaxes(selected_masks[:, 1:], 0, 1),
          jnp.swapaxes(q_all[:, 1:], 0, 1))
    _, mem_ys = jax.lax.scan(mem_step, (carry_ids, carry_mask, carry_pad), xs)
    mem_stack = jnp.swapaxes(mem_ys, 0, 1)                                  # [BS, SEQ-1, MEM]

    # 5) pooling + final classifier (tiny 2x(64,2) matmul: plain jnp, fused by XLA)
    v_final = max_pool(transformed_v_all, lengths)                          # [BS, D]
    gather_idx = jnp.broadcast_to((lengths - 2)[:, None, None], (BS, 1, MEM_SIZE))
    memory_final = jnp.take_along_axis(mem_stack, gather_idx, axis=1).reshape(BS, MEM_SIZE)
    mem_vec_final = max_pool(blk_table[memory_final])                       # [BS, D]
    feat = jnp.concatenate([v_final, mem_vec_final], axis=1)                # [BS, 2D]
    output = feat @ params["out"]["w"] + params["out"]["b"]
    return output, mem_stack


# ================= deterministic parameter / input construction =================

def pack_kernel_params(p):
    """Pre-pack / pre-cast all kernel operands once (hoisted out of the forward)."""
    big = jnp.zeros((TAB_ROWS, BLK_DIM), jnp.float32)
    big = big.at[0:NUM_DISEASE].set(p["target_disease_vectors"])
    big = big.at[BLK_OFF:BLK_OFF + BLK_VOCAB].set(p["blk_emb"])

    bt, att, am = p["blk_trans"], p["att"], p["att_mlp"]
    small = jnp.zeros((8, 2 * D_MODEL), jnp.float32)
    small = small.at[0, :].set(bt["b1"][0])
    small = small.at[1, 0:D_MODEL].set(bt["b2"][0])
    small = small.at[1, D_MODEL:].set(bt["gamma"][0])
    small = small.at[2, 0:D_MODEL].set(bt["beta"][0])
    small = small.at[2, D_MODEL:].set(att["bq"][0])
    small = small.at[3, 0:D_MODEL].set(att["bk"][0])
    small = small.at[3, D_MODEL:].set(att["bv"][0])
    small = small.at[4, 0:D_MODEL].set(att["bo"][0])
    small = small.at[4, D_MODEL:].set(am["b1"][0])
    small = small.at[5, 0:D_MODEL].set(am["w2"][:, 0])
    key_row = jnp.where(jnp.arange(2 * D_MODEL) < NUM_DISEASE, 0.0, -1e30)  # kernel reads [0:8]
    small = small.at[6, :].set(key_row)

    wpack = jnp.concatenate(
        [att["wq"], att["wk"], att["wv"], att["wo"],
         p["mem_update"]["wq"], am["w1a"], p["mem_update"]["wk"], am["w1b"]], axis=1)

    return {
        "big_x": big.astype(jnp.bfloat16),
        "w1": bt["w1"].astype(jnp.bfloat16),
        "w2": bt["w2"],
        "small": small,
        "wpack": wpack,                                       # (32, 256)
    }


def build_params(key):
    keys = iter(jax.random.split(key, 40))

    def rnd(shape, scale=0.05):
        return jax.random.normal(next(keys), shape, dtype=jnp.float32) * scale

    params = {
        "blk_emb": rnd((BLK_VOCAB, BLK_DIM), 0.1),            # frozen text-block embeddings
        "target_disease_vectors": rnd((NUM_DISEASE, BLK_DIM), 0.1),
        "blk_trans": {
            "w1": rnd((BLK_DIM, 2 * D_MODEL)), "b1": rnd((1, 2 * D_MODEL)),
            "w2": rnd((2 * D_MODEL, D_MODEL)), "b2": rnd((1, D_MODEL)),
            "gamma": jnp.ones((1, D_MODEL), jnp.float32),
            "beta": jnp.zeros((1, D_MODEL), jnp.float32),
        },
        "att": {
            "wq": rnd((D_MODEL, D_MODEL)), "bq": rnd((1, D_MODEL)),
            "wk": rnd((D_MODEL, D_MODEL)), "bk": rnd((1, D_MODEL)),
            "wv": rnd((D_MODEL, D_MODEL)), "bv": rnd((1, D_MODEL)),
            "wo": rnd((D_MODEL, D_MODEL)), "bo": rnd((1, D_MODEL)),
        },
        "att_mlp": {
            "w1a": rnd((D_MODEL, D_MODEL)),   # half of Linear(2D->D) acting on transformed_v_all
            "w1b": rnd((D_MODEL, D_MODEL)),   # half acting on v_text_all
            "b1": rnd((1, D_MODEL)),
            "w2": rnd((D_MODEL, 1)),          # Linear(D->1, bias=False)
        },
        "mem_update": {
            "wq": rnd((D_MODEL, D_MODEL)),
            "wk": rnd((D_MODEL, D_MODEL)),
        },
        "out": {"w": rnd((2 * D_MODEL, 2)), "b": rnd((1, 2))},
        "retain": {
            "emb1": rnd((VOCAB, D_MODEL), 0.1),
            "lstm1": {"wih": rnd((4 * D_MODEL, D_MODEL + 3)), "whh": rnd((4 * D_MODEL, D_MODEL)),
                      "bih": rnd((4 * D_MODEL,)), "bhh": rnd((4 * D_MODEL,))},
            "lstm2": {"wih": rnd((4 * D_MODEL, D_MODEL + 3)), "whh": rnd((4 * D_MODEL, D_MODEL)),
                      "bih": rnd((4 * D_MODEL,)), "bhh": rnd((4 * D_MODEL,))},
            "wa": rnd((D_MODEL, 1)),
            "wb": rnd((D_MODEL, D_MODEL)),
            "w_out": rnd((D_MODEL, 2)),
        },
    }
    params["kernel"] = pack_kernel_params(params)             # packed / bf16-cast once
    return params


if __name__ == "__main__":
    root = jax.random.PRNGKey(0)
    k_params, k_seq, k_txt, k_mask, k_time = jax.random.split(root, 5)

    params = build_params(k_params)

    input_seqs = jax.random.randint(k_seq, (BS, SEQ, CODES_PER_VISIT), 0, VOCAB, dtype=jnp.int32)
    masks_ehr = jnp.ones((BS, SEQ, CODES_PER_VISIT), jnp.int32)             # unused by forward
    input_txt = jax.random.randint(k_txt, (BS, SEQ, NUM_BLK), 0, BLK_VOCAB, dtype=jnp.int32)
    masks_txt = (jax.random.uniform(k_mask, (BS, SEQ, NUM_BLK)) < 0.8).astype(jnp.int32)
    lengths = jnp.array([SEQ, SEQ - 2], dtype=jnp.int32)
    time_step = jax.random.randint(k_time, (BS, SEQ), 0, 10, dtype=jnp.int32).astype(jnp.float32)
    code_mask = jnp.ones((BS, SEQ, CODES_PER_VISIT), jnp.int32)             # unused by forward

    output, memory_stack = text_decoder_forward(
        params, input_seqs, masks_ehr, input_txt, masks_txt, lengths, time_step, code_mask)
    jax.block_until_ready(output)
    jax.block_until_ready(memory_stack)

    assert output.shape == (BS, 2)
    assert memory_stack.shape == (BS, SEQ - 1, MEM_SIZE)
    print("KERNEL_OK")
</pallas_src>

<mosaic_0001>
module attributes {stable_mosaic.version = 11 : i64} {
  func.func @_fused_kernel(%arg0: i32, %arg1: memref<64x768xbf16, #tpu.memory_space<vmem>>, %arg2: memref<768x64xbf16, #tpu.memory_space<vmem>>, %arg3: memref<64x32xf32, #tpu.memory_space<vmem>>, %arg4: memref<8x64xf32, #tpu.memory_space<vmem>>, %arg5: memref<32x256xf32, #tpu.memory_space<vmem>>, %arg6: memref<16x32xf32, #tpu.memory_space<vmem>>, %arg7: memref<16x384xf32, #tpu.memory_space<vmem>>, %arg8: memref<16x6xi32, #tpu.memory_space<vmem>>, %arg9: memref<16x128xf32, #tpu.memory_space<vmem>>, %arg10: memref<64x64xf32, #tpu.memory_space<vmem>>) attributes {dimension_semantics = [#tpu.dimension_semantics<arbitrary>], iteration_bounds = array<i64: 1>, scalar_prefetch = 0 : i64, scratch_operands = 0 : i64, tpu.core_type = #tpu.core_type<tc>, window_params = [{pipeline_mode = #tpu.pipeline_mode<synchronous>, transform_indices = @transform_0, window_bounds = array<i64: 64, 768>}, {pipeline_mode = #tpu.pipeline_mode<synchronous>, transform_indices = @transform_1, window_bounds = array<i64: 768, 64>}, {pipeline_mode = #tpu.pipeline_mode<synchronous>, transform_indices = @transform_2, window_bounds = array<i64: 64, 32>}, {pipeline_mode = #tpu.pipeline_mode<synchronous>, transform_indices = @transform_3, window_bounds = array<i64: 8, 64>}, {pipeline_mode = #tpu.pipeline_mode<synchronous>, transform_indices = @transform_4, window_bounds = array<i64: 32, 256>}, {pipeline_mode = #tpu.pipeline_mode<synchronous>, transform_indices = @transform_5, window_bounds = array<i64: 16, 32>}, {pipeline_mode = #tpu.pipeline_mode<synchronous>, transform_indices = @transform_6, window_bounds = array<i64: 16, 384>}, {pipeline_mode = #tpu.pipeline_mode<synchronous>, transform_indices = @transform_7, window_bounds = array<i64: 16, 6>}, {pipeline_mode = #tpu.pipeline_mode<synchronous>, transform_indices = @transform_8, window_bounds = array<i64: 16, 128>}, {pipeline_mode = #tpu.pipeline_mode<synchronous>, transform_indices = @transform_9, window_bounds = array<i64: 64, 64>}]} {
    %c0 = arith.constant 0 : index
    %c0_0 = arith.constant 0 : index
    %0 = vector.load %arg4[%c0, %c0_0] : memref<8x64xf32, #tpu.memory_space<vmem>>, vector<8x64xf32>
    %c0_1 = arith.constant 0 : index
    %c0_2 = arith.constant 0 : index
    %1 = vector.load %arg5[%c0_1, %c0_2] : memref<32x256xf32, #tpu.memory_space<vmem>>, vector<32x256xf32>
    %2 = vector.extract_strided_slice %0 {offsets = [0, 0], sizes = [1, 64], strides = [1, 1]} : vector<8x64xf32> to vector<1x64xf32>
    %3 = vector.extract_strided_slice %0 {offsets = [1, 0], sizes = [1, 32], strides = [1, 1]} : vector<8x64xf32> to vector<1x32xf32>
    %4 = vector.extract_strided_slice %0 {offsets = [1, 32], sizes = [1, 32], strides = [1, 1]} : vector<8x64xf32> to vector<1x32xf32>
    %5 = vector.extract_strided_slice %0 {offsets = [2, 0], sizes = [1, 32], strides = [1, 1]} : vector<8x64xf32> to vector<1x32xf32>
    %6 = vector.extract_strided_slice %0 {offsets = [2, 32], sizes = [1, 32], strides = [1, 1]} : vector<8x64xf32> to vector<1x32xf32>
    %7 = vector.extract_strided_slice %0 {offsets = [3, 0], sizes = [1, 64], strides = [1, 1]} : vector<8x64xf32> to vector<1x64xf32>
    %8 = vector.extract_strided_slice %0 {offsets = [4, 0], sizes = [1, 32], strides = [1, 1]} : vector<8x64xf32> to vector<1x32xf32>
    %9 = vector.extract_strided_slice %0 {offsets = [4, 32], sizes = [1, 32], strides = [1, 1]} : vector<8x64xf32> to vector<1x32xf32>
    %10 = vector.extract_strided_slice %0 {offsets = [5, 0], sizes = [1, 32], strides = [1, 1]} : vector<8x64xf32> to vector<1x32xf32>
    %11 = vector.extract_strided_slice %0 {offsets = [6, 0], sizes = [1, 8], strides = [1, 1]} : vector<8x64xf32> to vector<1x8xf32>
    %c0_3 = arith.constant 0 : index
    %c0_4 = arith.constant 0 : index
    %12 = vector.load %arg1[%c0_3, %c0_4] : memref<64x768xbf16, #tpu.memory_space<vmem>>, vector<64x768xbf16>
    %c0_5 = arith.constant 0 : index
    %c0_6 = arith.constant 0 : index
    %13 = vector.load %arg2[%c0_5, %c0_6] : memref<768x64xbf16, #tpu.memory_space<vmem>>, vector<768x64xbf16>
    %cst = arith.constant dense<0.000000e+00> : vector<64x64xf32>
    %14 = tpu.matmul %12, %13, %cst {dimension_numbers = #tpu.dot_dimension_numbers<[1], [0], [0], [1], [0, 0, 1, 1], [], []>} : vector<64x768xbf16>, vector<768x64xbf16>, vector<64x64xf32> -> vector<64x64xf32>
    %15 = vector.broadcast %2 : vector<1x64xf32> to vector<64x64xf32>
    %16 = arith.addf %14, %15 : vector<64x64xf32>
    %cst_7 = arith.constant 0.000000e+00 : f32
    %17 = vector.broadcast %cst_7 : f32 to vector<64x64xf32>
    %18 = arith.maximumf %16, %17 : vector<64x64xf32>
    %c0_8 = arith.constant 0 : index
    %c0_9 = arith.constant 0 : index
    %19 = vector.load %arg3[%c0_8, %c0_9] : memref<64x32xf32, #tpu.memory_space<vmem>>, vector<64x32xf32>
    %cst_10 = arith.constant dense<0.000000e+00> : vector<64x32xf32>
    %20 = tpu.matmul %18, %19, %cst_10 {dimension_numbers = #tpu.dot_dimension_numbers<[1], [0], [0], [1], [0, 0, 1, 1], [], []>} : vector<64x64xf32>, vector<64x32xf32>, vector<64x32xf32> -> vector<64x32xf32>
    %21 = vector.broadcast %3 : vector<1x32xf32> to vector<64x32xf32>
    %22 = arith.addf %20, %21 : vector<64x32xf32>
    %cst_11 = arith.constant dense<0.000000e+00> : vector<64xf32>
    %23 = vector.multi_reduction <add>, %22, %cst_11 [1] : vector<64x32xf32> to vector<64xf32>
    %24 = vector.shape_cast %23 : vector<64xf32> to vector<64x1xf32>
    %cst_12 = arith.constant 3.200000e+01 : f32
    %25 = vector.broadcast %cst_12 : f32 to vector<64x1xf32>
    %26 = arith.divf %24, %25 : vector<64x1xf32>
    %27 = vector.broadcast %26 : vector<64x1xf32> to vector<64x32xf32>
    %28 = arith.subf %22, %27 : vector<64x32xf32>
    %29 = vector.broadcast %26 : vector<64x1xf32> to vector<64x32xf32>
    %30 = arith.subf %22, %29 : vector<64x32xf32>
    %31 = arith.mulf %28, %30 : vector<64x32xf32>
    %cst_13 = arith.constant dense<0.000000e+00> : vector<64xf32>
    %32 = vector.multi_reduction <add>, %31, %cst_13 [1] : vector<64x32xf32> to vector<64xf32>
    %33 = vector.shape_cast %32 : vector<64xf32> to vector<64x1xf32>
    %cst_14 = arith.constant 3.200000e+01 : f32
    %34 = vector.broadcast %cst_14 : f32 to vector<64x1xf32>
    %35 = arith.divf %33, %34 : vector<64x1xf32>
    %36 = vector.broadcast %26 : vector<64x1xf32> to vector<64x32xf32>
    %37 = arith.subf %22, %36 : vector<64x32xf32>
    %cst_15 = arith.constant 9.99999974E-6 : f32
    %38 = vector.broadcast %cst_15 : f32 to vector<64x1xf32>
    %39 = arith.addf %35, %38 : vector<64x1xf32>
    %40 = math.rsqrt %39 : vector<64x1xf32>
    %41 = vector.broadcast %40 : vector<64x1xf32> to vector<64x32xf32>
    %42 = arith.mulf %37, %41 : vector<64x32xf32>
    %43 = vector.broadcast %4 : vector<1x32xf32> to vector<64x32xf32>
    %44 = arith.mulf %42, %43 : vector<64x32xf32>
    %45 = vector.broadcast %5 : vector<1x32xf32> to vector<64x32xf32>
    %46 = arith.addf %44, %45 : vector<64x32xf32>
    %47 = vector.extract_strided_slice %1 {offsets = [0, 192], sizes = [32, 64], strides = [1, 1]} : vector<32x256xf32> to vector<32x64xf32>
    %cst_16 = arith.constant dense<0.000000e+00> : vector<64x64xf32>
    %48 = tpu.matmul %46, %47, %cst_16 {dimension_numbers = #tpu.dot_dimension_numbers<[1], [0], [0], [1], [0, 0, 1, 1], [], []>} : vector<64x32xf32>, vector<32x64xf32>, vector<64x64xf32> -> vector<64x64xf32>
    %c0_17 = arith.constant 0 : index
    %c0_18 = arith.constant 0 : index
    %49 = vector.load %arg10[%c0_17, %c0_18] : memref<64x64xf32, #tpu.memory_space<vmem>>, vector<64x32xf32>
    tpu.vector_store %arg10[%c0_17, %c0_18], %46 {strides = array<i32>} : memref<64x64xf32, #tpu.memory_space<vmem>>, vector<64x32xf32>,
    %50 = vector.extract_strided_slice %48 {offsets = [0, 0], sizes = [64, 32], strides = [1, 1]} : vector<64x64xf32> to vector<64x32xf32>
    %c0_19 = arith.constant 0 : index
    %c32 = arith.constant 32 : index
    %51 = vector.load %arg10[%c0_19, %c32] : memref<64x64xf32, #tpu.memory_space<vmem>>, vector<64x32xf32>
    tpu.vector_store %arg10[%c0_19, %c32], %50 {strides = array<i32>} : memref<64x64xf32, #tpu.memory_space<vmem>>, vector<64x32xf32>,
    %52 = vector.extract_strided_slice %48 {offsets = [0, 32], sizes = [64, 32], strides = [1, 1]} : vector<64x64xf32> to vector<64x32xf32>
    %c0_20 = arith.constant 0 : index
    %c0_21 = arith.constant 0 : index
    %53 = vector.load %arg6[%c0_20, %c0_21] : memref<16x32xf32, #tpu.memory_space<vmem>>, vector<16x32xf32>
    %54 = vector.extract_strided_slice %1 {offsets = [0, 0], sizes = [32, 32], strides = [1, 1]} : vector<32x256xf32> to vector<32x32xf32>
    %cst_22 = arith.constant dense<0.000000e+00> : vector<16x32xf32>
    %55 = tpu.matmul %53, %54, %cst_22 {dimension_numbers = #tpu.dot_dimension_numbers<[1], [0], [0], [1], [0, 0, 1, 1], [], []>} : vector<16x32xf32>, vector<32x32xf32>, vector<16x32xf32> -> vector<16x32xf32>
    %56 = vector.broadcast %6 : vector<1x32xf32> to vector<16x32xf32>
    %57 = arith.addf %55, %56 : vector<16x32xf32>
    %58 = vector.extract_strided_slice %46 {offsets = [0, 0], sizes = [8, 32], strides = [1, 1]} : vector<64x32xf32> to vector<8x32xf32>
    %59 = vector.extract_strided_slice %1 {offsets = [0, 32], sizes = [32, 64], strides = [1, 1]} : vector<32x256xf32> to vector<32x64xf32>
    %cst_23 = arith.constant dense<0.000000e+00> : vector<8x64xf32>
    %60 = tpu.matmul %58, %59, %cst_23 {dimension_numbers = #tpu.dot_dimension_numbers<[1], [0], [0], [1], [0, 0, 1, 1], [], []>} : vector<8x32xf32>, vector<32x64xf32>, vector<8x64xf32> -> vector<8x64xf32>
    %61 = vector.broadcast %7 : vector<1x64xf32> to vector<8x64xf32>
    %62 = arith.addf %60, %61 : vector<8x64xf32>
    %63 = vector.extract_strided_slice %62 {offsets = [0, 0], sizes = [8, 32], strides = [1, 1]} : vector<8x64xf32> to vector<8x32xf32>
    %64 = vector.extract_strided_slice %62 {offsets = [0, 32], sizes = [8, 32], strides = [1, 1]} : vector<8x64xf32> to vector<8x32xf32>
    %65 = vector.extract_strided_slice %57 {offsets = [0, 0], sizes = [16, 8], strides = [1, 1]} : vector<16x32xf32> to vector<16x8xf32>
    %66 = vector.extract_strided_slice %63 {offsets = [0, 0], sizes = [8, 8], strides = [1, 1]} : vector<8x32xf32> to vector<8x8xf32>
    %cst_24 = arith.constant dense<0.000000e+00> : vector<16x8xf32>
    %67 = tpu.matmul %65, %66, %cst_24 {dimension_numbers = #tpu.dot_dimension_numbers<[1], [1], [0], [0], [0, 0, 1, 0], [], []>} : vector<16x8xf32>, vector<8x8xf32>, vector<16x8xf32> -> vector<16x8xf32>
    %cst_25 = arith.constant 0.353553385 : f32
    %68 = vector.broadcast %cst_25 : f32 to vector<16x8xf32>
    %69 = arith.mulf %67, %68 : vector<16x8xf32>
    %70 = vector.broadcast %11 : vector<1x8xf32> to vector<16x8xf32>
    %71 = arith.addf %69, %70 : vector<16x8xf32>
    %cst_26 = arith.constant dense<0xFF800000> : vector<16xf32>
    %72 = vector.multi_reduction <maximumf>, %71, %cst_26 [1] : vector<16x8xf32> to vector<16xf32>
    %cst_27 = arith.constant 0xFF800000 : f32
    %73 = vector.broadcast %cst_27 : f32 to vector<16xf32>
    %74 = arith.maximumf %73, %72 : vector<16xf32>
    %75 = vector.shape_cast %74 : vector<16xf32> to vector<16x1xf32>
    %76 = vector.broadcast %75 : vector<16x1xf32> to vector<16x8xf32>
    %77 = arith.subf %71, %76 : vector<16x8xf32>
    %78 = math.exp %77 : vector<16x8xf32>
    %cst_28 = arith.constant dense<0.000000e+00> : vector<16xf32>
    %79 = vector.multi_reduction <add>, %78, %cst_28 [1] : vector<16x8xf32> to vector<16xf32>
    %80 = vector.shape_cast %79 : vector<16xf32> to vector<16x1xf32>
    %81 = vector.broadcast %80 : vector<16x1xf32> to vector<16x8xf32>
    %82 = arith.divf %78, %81 : vector<16x8xf32>
    %83 = vector.extract_strided_slice %64 {offsets = [0, 0], sizes = [8, 8], strides = [1, 1]} : vector<8x32xf32> to vector<8x8xf32>
    %cst_29 = arith.constant dense<0.000000e+00> : vector<16x8xf32>
    %84 = tpu.matmul %82, %83, %cst_29 {dimension_numbers = #tpu.dot_dimension_numbers<[1], [0], [0], [1], [0, 0, 1, 1], [], []>} : vector<16x8xf32>, vector<8x8xf32>, vector<16x8xf32> -> vector<16x8xf32>
    %85 = vector.extract_strided_slice %57 {offsets = [0, 8], sizes = [16, 8], strides = [1, 1]} : vector<16x32xf32> to vector<16x8xf32>
    %86 = vector.extract_strided_slice %63 {offsets = [0, 8], sizes = [8, 8], strides = [1, 1]} : vector<8x32xf32> to vector<8x8xf32>
    %cst_30 = arith.constant dense<0.000000e+00> : vector<16x8xf32>
    %87 = tpu.matmul %85, %86, %cst_30 {dimension_numbers = #tpu.dot_dimension_numbers<[1], [1], [0], [0], [0, 0, 1, 0], [], []>} : vector<16x8xf32>, vector<8x8xf32>, vector<16x8xf32> -> vector<16x8xf32>
    %cst_31 = arith.constant 0.353553385 : f32
    %88 = vector.broadcast %cst_31 : f32 to vector<16x8xf32>
    %89 = arith.mulf %87, %88 : vector<16x8xf32>
    %90 = vector.broadcast %11 : vector<1x8xf32> to vector<16x8xf32>
    %91 = arith.addf %89, %90 : vector<16x8xf32>
    %cst_32 = arith.constant dense<0xFF800000> : vector<16xf32>
    %92 = vector.multi_reduction <maximumf>, %91, %cst_32 [1] : vector<16x8xf32> to vector<16xf32>
    %cst_33 = arith.constant 0xFF800000 : f32
    %93 = vector.broadcast %cst_33 : f32 to vector<16xf32>
    %94 = arith.maximumf %93, %92 : vector<16xf32>
    %95 = vector.shape_cast %94 : vector<16xf32> to vector<16x1xf32>
    %96 = vector.broadcast %95 : vector<16x1xf32> to vector<16x8xf32>
    %97 = arith.subf %91, %96 : vector<16x8xf32>
    %98 = math.exp %97 : vector<16x8xf32>
    %cst_34 = arith.constant dense<0.000000e+00> : vector<16xf32>
    %99 = vector.multi_reduction <add>, %98, %cst_34 [1] : vector<16x8xf32> to vector<16xf32>
    %100 = vector.shape_cast %99 : vector<16xf32> to vector<16x1xf32>
    %101 = vector.broadcast %100 : vector<16x1xf32> to vector<16x8xf32>
    %102 = arith.divf %98, %101 : vector<16x8xf32>
    %103 = vector.extract_strided_slice %64 {offsets = [0, 8], sizes = [8, 8], strides = [1, 1]} : vector<8x32xf32> to vector<8x8xf32>
    %cst_35 = arith.constant dense<0.000000e+00> : vector<16x8xf32>
    %104 = tpu.matmul %102, %103, %cst_35 {dimension_numbers = #tpu.dot_dimension_numbers<[1], [0], [0], [1], [0, 0, 1, 1], [], []>} : vector<16x8xf32>, vector<8x8xf32>, vector<16x8xf32> -> vector<16x8xf32>
    %105 = vector.extract_strided_slice %57 {offsets = [0, 16], sizes = [16, 8], strides = [1, 1]} : vector<16x32xf32> to vector<16x8xf32>
    %106 = vector.extract_strided_slice %63 {offsets = [0, 16], sizes = [8, 8], strides = [1, 1]} : vector<8x32xf32> to vector<8x8xf32>
    %cst_36 = arith.constant dense<0.000000e+00> : vector<16x8xf32>
    %107 = tpu.matmul %105, %106, %cst_36 {dimension_numbers = #tpu.dot_dimension_numbers<[1], [1], [0], [0], [0, 0, 1, 0], [], []>} : vector<16x8xf32>, vector<8x8xf32>, vector<16x8xf32> -> vector<16x8xf32>
    %cst_37 = arith.constant 0.353553385 : f32
    %108 = vector.broadcast %cst_37 : f32 to vector<16x8xf32>
    %109 = arith.mulf %107, %108 : vector<16x8xf32>
    %110 = vector.broadcast %11 : vector<1x8xf32> to vector<16x8xf32>
    %111 = arith.addf %109, %110 : vector<16x8xf32>
    %cst_38 = arith.constant dense<0xFF800000> : vector<16xf32>
    %112 = vector.multi_reduction <maximumf>, %111, %cst_38 [1] : vector<16x8xf32> to vector<16xf32>
    %cst_39 = arith.constant 0xFF800000 : f32
    %113 = vector.broadcast %cst_39 : f32 to vector<16xf32>
    %114 = arith.maximumf %113, %112 : vector<16xf32>
    %115 = vector.shape_cast %114 : vector<16xf32> to vector<16x1xf32>
    %116 = vector.broadcast %115 : vector<16x1xf32> to vector<16x8xf32>
    %117 = arith.subf %111, %116 : vector<16x8xf32>
    %118 = math.exp %117 : vector<16x8xf32>
    %cst_40 = arith.constant dense<0.000000e+00> : vector<16xf32>
    %119 = vector.multi_reduction <add>, %118, %cst_40 [1] : vector<16x8xf32> to vector<16xf32>
    %120 = vector.shape_cast %119 : vector<16xf32> to vector<16x1xf32>
    %121 = vector.broadcast %120 : vector<16x1xf32> to vector<16x8xf32>
    %122 = arith.divf %118, %121 : vector<16x8xf32>
    %123 = vector.extract_strided_slice %64 {offsets = [0, 16], sizes = [8, 8], strides = [1, 1]} : vector<8x32xf32> to vector<8x8xf32>
    %cst_41 = arith.constant dense<0.000000e+00> : vector<16x8xf32>
    %124 = tpu.matmul %122, %123, %cst_41 {dimension_numbers = #tpu.dot_dimension_numbers<[1], [0], [0], [1], [0, 0, 1, 1], [], []>} : vector<16x8xf32>, vector<8x8xf32>, vector<16x8xf32> -> vector<16x8xf32>
    %125 = vector.extract_strided_slice %57 {offsets = [0, 24], sizes = [16, 8], strides = [1, 1]} : vector<16x32xf32> to vector<16x8xf32>
    %126 = vector.extract_strided_slice %63 {offsets = [0, 24], sizes = [8, 8], strides = [1, 1]} : vector<8x32xf32> to vector<8x8xf32>
    %cst_42 = arith.constant dense<0.000000e+00> : vector<16x8xf32>
    %127 = tpu.matmul %125, %126, %cst_42 {dimension_numbers = #tpu.dot_dimension_numbers<[1], [1], [0], [0], [0, 0, 1, 0], [], []>} : vector<16x8xf32>, vector<8x8xf32>, vector<16x8xf32> -> vector<16x8xf32>
    %cst_43 = arith.constant 0.353553385 : f32
    %128 = vector.broadcast %cst_43 : f32 to vector<16x8xf32>
    %129 = arith.mulf %127, %128 : vector<16x8xf32>
    %130 = vector.broadcast %11 : vector<1x8xf32> to vector<16x8xf32>
    %131 = arith.addf %129, %130 : vector<16x8xf32>
    %cst_44 = arith.constant dense<0xFF800000> : vector<16xf32>
    %132 = vector.multi_reduction <maximumf>, %131, %cst_44 [1] : vector<16x8xf32> to vector<16xf32>
    %cst_45 = arith.constant 0xFF800000 : f32
    %133 = vector.broadcast %cst_45 : f32 to vector<16xf32>
    %134 = arith.maximumf %133, %132 : vector<16xf32>
    %135 = vector.shape_cast %134 : vector<16xf32> to vector<16x1xf32>
    %136 = vector.broadcast %135 : vector<16x1xf32> to vector<16x8xf32>
    %137 = arith.subf %131, %136 : vector<16x8xf32>
    %138 = math.exp %137 : vector<16x8xf32>
    %cst_46 = arith.constant dense<0.000000e+00> : vector<16xf32>
    %139 = vector.multi_reduction <add>, %138, %cst_46 [1] : vector<16x8xf32> to vector<16xf32>
    %140 = vector.shape_cast %139 : vector<16xf32> to vector<16x1xf32>
    %141 = vector.broadcast %140 : vector<16x1xf32> to vector<16x8xf32>
    %142 = arith.divf %138, %141 : vector<16x8xf32>
    %143 = vector.extract_strided_slice %64 {offsets = [0, 24], sizes = [8, 8], strides = [1, 1]} : vector<8x32xf32> to vector<8x8xf32>
    %cst_47 = arith.constant dense<0.000000e+00> : vector<16x8xf32>
    %144 = tpu.matmul %142, %143, %cst_47 {dimension_numbers = #tpu.dot_dimension_numbers<[1], [0], [0], [1], [0, 0, 1, 1], [], []>} : vector<16x8xf32>, vector<8x8xf32>, vector<16x8xf32> -> vector<16x8xf32>
    %145 = tpu.concatenate %84, %104, %124, %144 in 1 : vector<16x8xf32>, vector<16x8xf32>, vector<16x8xf32>, vector<16x8xf32> -> vector<16x32xf32>
    %146 = vector.extract_strided_slice %1 {offsets = [0, 96], sizes = [32, 32], strides = [1, 1]} : vector<32x256xf32> to vector<32x32xf32>
    %cst_48 = arith.constant dense<0.000000e+00> : vector<16x32xf32>
    %147 = tpu.matmul %145, %146, %cst_48 {dimension_numbers = #tpu.dot_dimension_numbers<[1], [0], [0], [1], [0, 0, 1, 1], [], []>} : vector<16x32xf32>, vector<32x32xf32>, vector<16x32xf32> -> vector<16x32xf32>
    %148 = vector.broadcast %8 : vector<1x32xf32> to vector<16x32xf32>
    %149 = arith.addf %147, %148 : vector<16x32xf32>
    %150 = arith.addf %149, %53 : vector<16x32xf32>
    %151 = vector.extract_strided_slice %1 {offsets = [0, 128], sizes = [32, 32], strides = [1, 1]} : vector<32x256xf32> to vector<32x32xf32>
    %cst_49 = arith.constant dense<0.000000e+00> : vector<16x32xf32>
    %152 = tpu.matmul %150, %151, %cst_49 {dimension_numbers = #tpu.dot_dimension_numbers<[1], [0], [0], [1], [0, 0, 1, 1], [], []>} : vector<16x32xf32>, vector<32x32xf32>, vector<16x32xf32> -> vector<16x32xf32>
    %153 = vector.extract_strided_slice %1 {offsets = [0, 160], sizes = [32, 32], strides = [1, 1]} : vector<32x256xf32> to vector<32x32xf32>
    %cst_50 = arith.constant dense<0.000000e+00> : vector<16x32xf32>
    %154 = tpu.matmul %149, %153, %cst_50 {dimension_numbers = #tpu.dot_dimension_numbers<[1], [0], [0], [1], [0, 0, 1, 1], [], []>} : vector<16x32xf32>, vector<32x32xf32>, vector<16x32xf32> -> vector<16x32xf32>
    %155 = vector.broadcast %9 : vector<1x32xf32> to vector<16x32xf32>
    %156 = arith.addf %154, %155 : vector<16x32xf32>
    %cst_51 = arith.constant 0.000000e+00 : f32
    %157 = vector.broadcast %cst_51 : f32 to vector<16x6xf32>
    %158 = tpu.iota {dimensions = array<i32: 1>} : vector<1x6xi32>
    %c0_52 = arith.constant 0 : index
    %c0_53 = arith.constant 0 : index
    %159 = vector.load %arg7[%c0_52, %c0_53] : memref<16x384xf32, #tpu.memory_space<vmem>>, vector<16x64xf32>
    %cst_54 = arith.constant dense<0.000000e+00> : vector<16x32xf32>
    %160 = tpu.matmul %159, %52, %cst_54 {dimension_numbers = #tpu.dot_dimension_numbers<[1], [0], [0], [1], [0, 0, 1, 1], [], []>} : vector<16x64xf32>, vector<64x32xf32>, vector<16x32xf32> -> vector<16x32xf32>
    %161 = arith.addf %160, %156 : vector<16x32xf32>
    %162 = math.tanh %161 : vector<16x32xf32>
    %163 = vector.broadcast %10 : vector<1x32xf32> to vector<16x32xf32>
    %164 = arith.mulf %162, %163 : vector<16x32xf32>
    %cst_55 = arith.constant dense<0.000000e+00> : vector<16xf32>
    %165 = vector.multi_reduction <add>, %164, %cst_55 [1] : vector<16x32xf32> to vector<16xf32>
    %166 = vector.shape_cast %165 : vector<16xf32> to vector<16x1xf32>
    %c0_i32 = arith.constant 0 : i32
    %167 = vector.broadcast %c0_i32 : i32 to vector<1x6xi32>
    %168 = arith.cmpi eq, %158, %167 : vector<1x6xi32>
    %169 = arith.extui %168 : vector<1x6xi1> to vector<1x6xi32>
    %170 = arith.sitofp %169 : vector<1x6xi32> to vector<1x6xf32>
    %171 = vector.broadcast %166 : vector<16x1xf32> to vector<16x6xf32>
    %172 = vector.broadcast %170 : vector<1x6xf32> to vector<16x6xf32>
    %173 = arith.mulf %171, %172 : vector<16x6xf32>
    %174 = arith.addf %157, %173 : vector<16x6xf32>
    %c0_56 = arith.constant 0 : index
    %c64 = arith.constant 64 : index
    %175 = vector.load %arg7[%c0_56, %c64] : memref<16x384xf32, #tpu.memory_space<vmem>>, vector<16x64xf32>
    %cst_57 = arith.constant dense<0.000000e+00> : vector<16x32xf32>
    %176 = tpu.matmul %175, %52, %cst_57 {dimension_numbers = #tpu.dot_dimension_numbers<[1], [0], [0], [1], [0, 0, 1, 1], [], []>} : vector<16x64xf32>, vector<64x32xf32>, vector<16x32xf32> -> vector<16x32xf32>
    %177 = arith.addf %176, %156 : vector<16x32xf32>
    %178 = math.tanh %177 : vector<16x32xf32>
    %179 = vector.broadcast %10 : vector<1x32xf32> to vector<16x32xf32>
    %180 = arith.mulf %178, %179 : vector<16x32xf32>
    %cst_58 = arith.constant dense<0.000000e+00> : vector<16xf32>
    %181 = vector.multi_reduction <add>, %180, %cst_58 [1] : vector<16x32xf32> to vector<16xf32>
    %182 = vector.shape_cast %181 : vector<16xf32> to vector<16x1xf32>
    %c1_i32 = arith.constant 1 : i32
    %183 = vector.broadcast %c1_i32 : i32 to vector<1x6xi32>
    %184 = arith.cmpi eq, %158, %183 : vector<1x6xi32>
    %185 = arith.extui %184 : vector<1x6xi1> to vector<1x6xi32>
    %186 = arith.sitofp %185 : vector<1x6xi32> to vector<1x6xf32>
    %187 = vector.broadcast %182 : vector<16x1xf32> to vector<16x6xf32>
    %188 = vector.broadcast %186 : vector<1x6xf32> to vector<16x6xf32>
    %189 = arith.mulf %187, %188 : vector<16x6xf32>
    %190 = arith.addf %174, %189 : vector<16x6xf32>
    %c0_59 = arith.constant 0 : index
    %c128 = arith.constant 128 : index
    %191 = vector.load %arg7[%c0_59, %c128] : memref<16x384xf32, #tpu.memory_space<vmem>>, vector<16x64xf32>
    %cst_60 = arith.constant dense<0.000000e+00> : vector<16x32xf32>
    %192 = tpu.matmul %191, %52, %cst_60 {dimension_numbers = #tpu.dot_dimension_numbers<[1], [0], [0], [1], [0, 0, 1, 1], [], []>} : vector<16x64xf32>, vector<64x32xf32>, vector<16x32xf32> -> vector<16x32xf32>
    %193 = arith.addf %192, %156 : vector<16x32xf32>
    %194 = math.tanh %193 : vector<16x32xf32>
    %195 = vector.broadcast %10 : vector<1x32xf32> to vector<16x32xf32>
    %196 = arith.mulf %194, %195 : vector<16x32xf32>
    %cst_61 = arith.constant dense<0.000000e+00> : vector<16xf32>
    %197 = vector.multi_reduction <add>, %196, %cst_61 [1] : vector<16x32xf32> to vector<16xf32>
    %198 = vector.shape_cast %197 : vector<16xf32> to vector<16x1xf32>
    %c2_i32 = arith.constant 2 : i32
    %199 = vector.broadcast %c2_i32 : i32 to vector<1x6xi32>
    %200 = arith.cmpi eq, %158, %199 : vector<1x6xi32>
    %201 = arith.extui %200 : vector<1x6xi1> to vector<1x6xi32>
    %202 = arith.sitofp %201 : vector<1x6xi32> to vector<1x6xf32>
    %203 = vector.broadcast %198 : vector<16x1xf32> to vector<16x6xf32>
    %204 = vector.broadcast %202 : vector<1x6xf32> to vector<16x6xf32>
    %205 = arith.mulf %203, %204 : vector<16x6xf32>
    %206 = arith.addf %190, %205 : vector<16x6xf32>
    %c0_62 = arith.constant 0 : index
    %c192 = arith.constant 192 : index
    %207 = vector.load %arg7[%c0_62, %c192] : memref<16x384xf32, #tpu.memory_space<vmem>>, vector<16x64xf32>
    %cst_63 = arith.constant dense<0.000000e+00> : vector<16x32xf32>
    %208 = tpu.matmul %207, %52, %cst_63 {dimension_numbers = #tpu.dot_dimension_numbers<[1], [0], [0], [1], [0, 0, 1, 1], [], []>} : vector<16x64xf32>, vector<64x32xf32>, vector<16x32xf32> -> vector<16x32xf32>
    %209 = arith.addf %208, %156 : vector<16x32xf32>
    %210 = math.tanh %209 : vector<16x32xf32>
    %211 = vector.broadcast %10 : vector<1x32xf32> to vector<16x32xf32>
    %212 = arith.mulf %210, %211 : vector<16x32xf32>
    %cst_64 = arith.constant dense<0.000000e+00> : vector<16xf32>
    %213 = vector.multi_reduction <add>, %212, %cst_64 [1] : vector<16x32xf32> to vector<16xf32>
    %214 = vector.shape_cast %213 : vector<16xf32> to vector<16x1xf32>
    %c3_i32 = arith.constant 3 : i32
    %215 = vector.broadcast %c3_i32 : i32 to vector<1x6xi32>
    %216 = arith.cmpi eq, %158, %215 : vector<1x6xi32>
    %217 = arith.extui %216 : vector<1x6xi1> to vector<1x6xi32>
    %218 = arith.sitofp %217 : vector<1x6xi32> to vector<1x6xf32>
    %219 = vector.broadcast %214 : vector<16x1xf32> to vector<16x6xf32>
    %220 = vector.broadcast %218 : vector<1x6xf32> to vector<16x6xf32>
    %221 = arith.mulf %219, %220 : vector<16x6xf32>
    %222 = arith.addf %206, %221 : vector<16x6xf32>
    %c0_65 = arith.constant 0 : index
    %c256 = arith.constant 256 : index
    %223 = vector.load %arg7[%c0_65, %c256] : memref<16x384xf32, #tpu.memory_space<vmem>>, vector<16x64xf32>
    %cst_66 = arith.constant dense<0.000000e+00> : vector<16x32xf32>
    %224 = tpu.matmul %223, %52, %cst_66 {dimension_numbers = #tpu.dot_dimension_numbers<[1], [0], [0], [1], [0, 0, 1, 1], [], []>} : vector<16x64xf32>, vector<64x32xf32>, vector<16x32xf32> -> vector<16x32xf32>
    %225 = arith.addf %224, %156 : vector<16x32xf32>
    %226 = math.tanh %225 : vector<16x32xf32>
    %227 = vector.broadcast %10 : vector<1x32xf32> to vector<16x32xf32>
    %228 = arith.mulf %226, %227 : vector<16x32xf32>
    %cst_67 = arith.constant dense<0.000000e+00> : vector<16xf32>
    %229 = vector.multi_reduction <add>, %228, %cst_67 [1] : vector<16x32xf32> to vector<16xf32>
    %230 = vector.shape_cast %229 : vector<16xf32> to vector<16x1xf32>
    %c4_i32 = arith.constant 4 : i32
    %231 = vector.broadcast %c4_i32 : i32 to vector<1x6xi32>
    %232 = arith.cmpi eq, %158, %231 : vector<1x6xi32>
    %233 = arith.extui %232 : vector<1x6xi1> to vector<1x6xi32>
    %234 = arith.sitofp %233 : vector<1x6xi32> to vector<1x6xf32>
    %235 = vector.broadcast %230 : vector<16x1xf32> to vector<16x6xf32>
    %236 = vector.broadcast %234 : vector<1x6xf32> to vector<16x6xf32>
    %237 = arith.mulf %235, %236 : vector<16x6xf32>
    %238 = arith.addf %222, %237 : vector<16x6xf32>
    %c0_68 = arith.constant 0 : index
    %c320 = arith.constant 320 : index
    %239 = vector.load %arg7[%c0_68, %c320] : memref<16x384xf32, #tpu.memory_space<vmem>>, vector<16x64xf32>
    %cst_69 = arith.constant dense<0.000000e+00> : vector<16x32xf32>
    %240 = tpu.matmul %239, %52, %cst_69 {dimension_numbers = #tpu.dot_dimension_numbers<[1], [0], [0], [1], [0, 0, 1, 1], [], []>} : vector<16x64xf32>, vector<64x32xf32>, vector<16x32xf32> -> vector<16x32xf32>
    %241 = arith.addf %240, %156 : vector<16x32xf32>
    %242 = math.tanh %241 : vector<16x32xf32>
    %243 = vector.broadcast %10 : vector<1x32xf32> to vector<16x32xf32>
    %244 = arith.mulf %242, %243 : vector<16x32xf32>
    %cst_70 = arith.constant dense<0.000000e+00> : vector<16xf32>
    %245 = vector.multi_reduction <add>, %244, %cst_70 [1] : vector<16x32xf32> to vector<16xf32>
    %246 = vector.shape_cast %245 : vector<16xf32> to vector<16x1xf32>
    %c5_i32 = arith.constant 5 : i32
    %247 = vector.broadcast %c5_i32 : i32 to vector<1x6xi32>
    %248 = arith.cmpi eq, %158, %247 : vector<1x6xi32>
    %249 = arith.extui %248 : vector<1x6xi1> to vector<1x6xi32>
    %250 = arith.sitofp %249 : vector<1x6xi32> to vector<1x6xf32>
    %251 = vector.broadcast %246 : vector<16x1xf32> to vector<16x6xf32>
    %252 = vector.broadcast %250 : vector<1x6xf32> to vector<16x6xf32>
    %253 = arith.mulf %251, %252 : vector<16x6xf32>
    %254 = arith.addf %238, %253 : vector<16x6xf32>
    %cst_71 = arith.constant dense<0xFF800000> : vector<16xf32>
    %255 = vector.multi_reduction <maximumf>, %254, %cst_71 [1] : vector<16x6xf32> to vector<16xf32>
    %cst_72 = arith.constant 0xFF800000 : f32
    %256 = vector.broadcast %cst_72 : f32 to vector<16xf32>
    %257 = arith.maximumf %256, %255 : vector<16xf32>
    %258 = vector.shape_cast %257 : vector<16xf32> to vector<16x1xf32>
    %259 = vector.broadcast %258 : vector<16x1xf32> to vector<16x6xf32>
    %260 = arith.subf %254, %259 : vector<16x6xf32>
    %261 = math.exp %260 : vector<16x6xf32>
    %cst_73 = arith.constant dense<0.000000e+00> : vector<16xf32>
    %262 = vector.multi_reduction <add>, %261, %cst_73 [1] : vector<16x6xf32> to vector<16xf32>
    %263 = vector.shape_cast %262 : vector<16xf32> to vector<16x1xf32>
    %264 = vector.broadcast %263 : vector<16x1xf32> to vector<16x6xf32>
    %265 = arith.divf %261, %264 : vector<16x6xf32>
    %c0_74 = arith.constant 0 : index
    %c0_75 = arith.constant 0 : index
    %266 = vector.load %arg8[%c0_74, %c0_75] : memref<16x6xi32, #tpu.memory_space<vmem>>, vector<16x6xi32>
    %c0_i32_76 = arith.constant 0 : i32
    %267 = vector.broadcast %c0_i32_76 : i32 to vector<16x6xi32>
    %268 = arith.cmpi eq, %266, %267 : vector<16x6xi32>
    %cst_77 = arith.constant 0.000000e+00 : f32
    %269 = vector.broadcast %cst_77 : f32 to vector<16x6xf32>
    %270 = arith.select %268, %269, %265 : vector<16x6xi1>, vector<16x6xf32>
    %cst_78 = arith.constant 0.000000e+00 : f32
    %271 = vector.broadcast %cst_78 : f32 to vector<16x128xf32>
    %c0_79 = arith.constant 0 : index
    %c0_80 = arith.constant 0 : index
    %272 = vector.load %arg9[%c0_79, %c0_80] : memref<16x128xf32, #tpu.memory_space<vmem>>, vector<16x128xf32>
    tpu.vector_store %arg9[%c0_79, %c0_80], %271 {strides = array<i32>} : memref<16x128xf32, #tpu.memory_space<vmem>>, vector<16x128xf32>,
    %c0_81 = arith.constant 0 : index
    %c0_82 = arith.constant 0 : index
    %273 = vector.load %arg9[%c0_81, %c0_82] : memref<16x128xf32, #tpu.memory_space<vmem>>, vector<16x32xf32>
    tpu.vector_store %arg9[%c0_81, %c0_82], %149 {strides = array<i32>} : memref<16x128xf32, #tpu.memory_space<vmem>>, vector<16x32xf32>,
    %c0_83 = arith.constant 0 : index
    %c32_84 = arith.constant 32 : index
    %274 = vector.load %arg9[%c0_83, %c32_84] : memref<16x128xf32, #tpu.memory_space<vmem>>, vector<16x32xf32>
    tpu.vector_store %arg9[%c0_83, %c32_84], %152 {strides = array<i32>} : memref<16x128xf32, #tpu.memory_space<vmem>>, vector<16x32xf32>,
    %c0_85 = arith.constant 0 : index
    %c64_86 = arith.constant 64 : index
    %275 = vector.load %arg9[%c0_85, %c64_86] : memref<16x128xf32, #tpu.memory_space<vmem>>, vector<16x6xf32>
    tpu.vector_store %arg9[%c0_85, %c64_86], %270 {strides = array<i32>} : memref<16x128xf32, #tpu.memory_space<vmem>>, vector<16x6xf32>,
    return
  }
  func.func @transform_0(%arg0: i32) -> (i32, i32) {
    %c0_i32 = arith.constant 0 : i32
    %c0_i32_0 = arith.constant 0 : i32
    %c0_i32_1 = arith.constant 0 : i32
    return %c0_i32, %c0_i32_0 : i32, i32
  }
  func.func @transform_1(%arg0: i32) -> (i32, i32) {
    %c0_i32 = arith.constant 0 : i32
    %c0_i32_0 = arith.constant 0 : i32
    %c0_i32_1 = arith.constant 0 : i32
    return %c0_i32, %c0_i32_0 : i32, i32
  }
  func.func @transform_2(%arg0: i32) -> (i32, i32) {
    %c0_i32 = arith.constant 0 : i32
    %c0_i32_0 = arith.constant 0 : i32
    %c0_i32_1 = arith.constant 0 : i32
    return %c0_i32, %c0_i32_0 : i32, i32
  }
  func.func @transform_3(%arg0: i32) -> (i32, i32) {
    %c0_i32 = arith.constant 0 : i32
    %c0_i32_0 = arith.constant 0 : i32
    %c0_i32_1 = arith.constant 0 : i32
    return %c0_i32, %c0_i32_0 : i32, i32
  }
  func.func @transform_4(%arg0: i32) -> (i32, i32) {
    %c0_i32 = arith.constant 0 : i32
    %c0_i32_0 = arith.constant 0 : i32
    %c0_i32_1 = arith.constant 0 : i32
    return %c0_i32, %c0_i32_0 : i32, i32
  }
  func.func @transform_5(%arg0: i32) -> (i32, i32) {
    %c0_i32 = arith.constant 0 : i32
    %c0_i32_0 = arith.constant 0 : i32
    %c0_i32_1 = arith.constant 0 : i32
    return %c0_i32, %c0_i32_0 : i32, i32
  }
  func.func @transform_6(%arg0: i32) -> (i32, i32) {
    %c0_i32 = arith.constant 0 : i32
    %c0_i32_0 = arith.constant 0 : i32
    %c0_i32_1 = arith.constant 0 : i32
    return %c0_i32, %c0_i32_0 : i32, i32
  }
  func.func @transform_7(%arg0: i32) -> (i32, i32) {
    %c0_i32 = arith.constant 0 : i32
    %c0_i32_0 = arith.constant 0 : i32
    %c0_i32_1 = arith.constant 0 : i32
    return %c0_i32, %c0_i32_0 : i32, i32
  }
  func.func @transform_8(%arg0: i32) -> (i32, i32) {
    %c0_i32 = arith.constant 0 : i32
    %c0_i32_0 = arith.constant 0 : i32
    %c0_i32_1 = arith.constant 0 : i32
    return %c0_i32, %c0_i32_0 : i32, i32
  }
  func.func @transform_9(%arg0: i32) -> (i32, i32) {
    %c0_i32 = arith.constant 0 : i32
    %c0_i32_0 = arith.constant 0 : i32
    %c0_i32_1 = arith.constant 0 : i32
    return %c0_i32, %c0_i32_0 : i32, i32
  }
}

</mosaic_0001>

<bundles_post_ra>
// kernel: custom-call.35
= control target key start
LH: loop header
LB: loop body
LE: loop exit
PB: predicated region body
PF: predicated region fallthrough
CT: control target
= control target key end

     0   :  { %s6_s0 = inlined_call_operand.vmem [shape: f32[8,2,32], index: 0, kind: output, shape index: {}]  }

// kernel: custom-call.15
= control target key start
LH: loop header
LB: loop body
LE: loop exit
PB: predicated region body
PF: predicated region fallthrough
CT: control target
= control target key end

     0   :  { %s6_s0 = inlined_call_operand.vmem [shape: f32[2,32], index: 0, kind: output, shape index: {}]  }

// kernel: custom-call.14
= control target key start
LH: loop header
LB: loop body
LE: loop exit
PB: predicated region body
PF: predicated region fallthrough
CT: control target
= control target key end

     0   :  { %s6_s0 = inlined_call_operand.vmem [shape: bf16[2,32], index: 0, kind: output, shape index: {}]  }

// kernel: custom-call.26
= control target key start
LH: loop header
LB: loop body
LE: loop exit
PB: predicated region body
PF: predicated region fallthrough
CT: control target
= control target key end

     0   :  { %s6_s0 = inlined_call_operand.vmem [shape: s32[7,2,4], index: 0, kind: output, shape index: {}]  }

// kernel: text_decoder_forward.1
= control target key start
LH: loop header
LB: loop body
LE: loop exit
PB: predicated region body
PF: predicated region fallthrough
CT: control target
= control target key end

     0   :  { %vm788_vm0 = vcmask 523264   ;;  %vm918_vm1 = vcmask 261120   ;;  %s4261_s28 = smov 64   ;;  %s4262_s15 = smov 96   ;;  %vm4264_vm2 = vmmov 0   ;;  %vm1419_vm3 = vcmask 64512   ;;  %s5145_s1 = inlined_call_operand.vmem [shape: bf16[768,64], index: 1, kind: input, shape index: {}]   ;;  %s5146_s0 = inlined_call_operand.vmem [shape: bf16[64,768], index: 0, kind: input, shape index: {}]   ;;  %s5147_s2 = inlined_call_operand.vmem [shape: f32[64,32], index: 2, kind: input, shape index: {}]   ;;  %s5148_s3 = inlined_call_operand.vmem [shape: f32[8,64], index: 3, kind: input, shape index: {}]   ;;  %s5149_s4 = inlined_call_operand.vmem [shape: f32[32,256], index: 4, kind: input, shape index: {}]   ;;  %s5150_s5 = inlined_call_operand.vmem [shape: f32[16,32], index: 5, kind: input, shape index: {}]   ;;  %s5151_s9 = inlined_call_operand.vmem [shape: f32[64,64], index: 9, kind: output, shape index: {1}]   ;;  %s5152_s6 = inlined_call_operand.vmem [shape: f32[16,384], index: 6, kind: input, shape index: {}]   ;;  %s5153_s8 = inlined_call_operand.vmem [shape: f32[16,128], index: 8, kind: output, shape index: {0}]   ;;  %s5154_s7 = inlined_call_operand.vmem [shape: s32[16,6], index: 7, kind: input, shape index: {}]  }
   0x1   :  { %v4096_v0 = vld [vmem:[%s5145_s1 + $0x40] sm:$0xff]   ;;  %v4100_v4 = vld [vmem:[%s5145_s1 + $0x48] sm:$0xff]   ;;  %v4104_v8 = vld [vmem:[%s5145_s1 + $0x50] sm:$0xff]   ;;  %s4266_s12 = smov 120   ;;  %s4268_s13 = smov 104   ;;  %vm2235_vm4 = vcmask 130048  }
   0x2   :  { %v4097_v1 = vld [vmem:[%s5145_s1] sm:$0xff]   ;;  %3345 = vmatprep.subr.bf16.mxu0 %v4096_v0  ;;  %v4101_v5 = vld [vmem:[%s5145_s1 + $0x8] sm:$0xff]   ;;  %v4105_v9 = vld [vmem:[%s5145_s1 + $0x10] sm:$0xff]   ;;  %s4269_s14 = smov 80   ;;  %s4271_s16 = smov 72   ;;  %vm2238_vm5 = vcmask 195584  }
   0x3   :  { %v4098_v2 = vld [vmem:[%s5145_s1 + $0xc0] sm:$0xff]   ;;  %3346 = vmatpush3.bf16.msra.mxu0 %v4097_v1  ;;  %v4102_v6 = vld [vmem:[%s5145_s1 + $0xc8] sm:$0xff]   ;;  %v4106_v10 = vld [vmem:[%s5145_s1 + $0xd0] sm:$0xff]   ;;  %s4272_s17 = smov 32   ;;  %s4273_s18 = smov 8   ;;  %vm3148_vm12 = vcmask 48128  }
   0x4   :  { %v4099_v3 = vld [vmem:[%s5145_s1 + $0x80] sm:$0xff]   ;;  %3385 = vmatprep.subr.bf16.mxu1 %v4098_v2  ;;  %3347 = vmatprep.subr.bf16.mxu0 %v4100_v4  ;;  %v4103_v7 = vld [vmem:[%s5145_s1 + $0x88] sm:$0xff]   ;;  %v4107_v11 = vld [vmem:[%s5145_s1 + $0x90] sm:$0xff]   ;;  %s4275_s19 = smov 24   ;;  %vm1233_vm13 = vcmask 523520  }
   0x5   :  { %3386 = vmatpush3.bf16.msra.mxu1 %v4099_v3  ;;  %v4108_v12 = vld [vmem:[%s5145_s1 + $0x58] sm:$0xff]   ;;  %v4112_v16 = vld [vmem:[%s5145_s1 + $0x60] sm:$0xff]   ;;  %v4116_v20 = vld [vmem:[%s5145_s1 + $0x68] sm:$0xff]  }
   0x6   :  { %3387 = vmatprep.subr.bf16.mxu1 %v4102_v6  ;;  %v4109_v13 = vld [vmem:[%s5145_s1 + $0x18] sm:$0xff]   ;;  %v4113_v17 = vld [vmem:[%s5145_s1 + $0x20] sm:$0xff]   ;;  %v4117_v21 = vld [vmem:[%s5145_s1 + $0x28] sm:$0xff]  }
   0x7   :  { %3348 = vmatpush3.bf16.msra.mxu0 %v4101_v5  ;;  %v4110_v14 = vld [vmem:[%s5145_s1 + $0xd8] sm:$0xff]   ;;  %v4114_v18 = vld [vmem:[%s5145_s1 + $0xe0] sm:$0xff]   ;;  %v4118_v22 = vld [vmem:[%s5145_s1 + $0xe8] sm:$0xff]  }
   0x8   :  { %3349 = vmatprep.subr.bf16.mxu0 %v4104_v8  ;;  %v4111_v15 = vld [vmem:[%s5145_s1 + $0x98] sm:$0xff]   ;;  %v4115_v19 = vld [vmem:[%s5145_s1 + $0xa0] sm:$0xff]   ;;  %v4119_v23 = vld [vmem:[%s5145_s1 + $0xa8] sm:$0xff]  }
   0x9   :  { %3388 = vmatpush3.bf16.msra.mxu1 %v4103_v7  ;;  %v4120_v24 = vld [vmem:[%s5145_s1 + $0x70] sm:$0xff]   ;;  %v4124_v28 = vld [vmem:[%s5145_s1 + $0x78] sm:$0xff]   ;;  %v4131_v34 = vld [vmem:[%s5145_s1 + $0x140] sm:$0xff]  }
   0xa   :  { %3389 = vmatprep.subr.bf16.mxu1 %v4106_v10  ;;  %v4121_v25 = vld [vmem:[%s5145_s1 + $0x30] sm:$0xff]   ;;  %v4125_v29 = vld [vmem:[%s5145_s1 + $0x38] sm:$0xff]   ;;  %v4132_v35 = vld [vmem:[%s5146_s0 + $0x8] ss:$24 sps:$4 sm:$0xff]  }
   0xb   :  { %3350 = vmatpush3.bf16.msra.mxu0 %v4105_v9  ;;  %v4122_v26 = vld [vmem:[%s5145_s1 + $0xf0] sm:$0xff]   ;;  %v4126_v30 = vld [vmem:[%s5145_s1 + $0xf8] sm:$0xff]   ;;  %v4134_v36 = vld [vmem:[%s5146_s0 + $0xc] ss:$24 sps:$4 sm:$0xff]  }
   0xc   :  { %3351 = vmatprep.subr.bf16.mxu0 %v4108_v12  ;;  %v4123_v27 = vld [vmem:[%s5145_s1 + $0xb0] sm:$0xff]   ;;  %v4127_v31 = vld [vmem:[%s5146_s0] ss:$24 sps:$4 sm:$0xff]   ;;  %v4129_v32 = vld [vmem:[%s5146_s0 + $0x4] ss:$24 sps:$4 sm:$0xff]   ;;  %670 = vmatprep.mubr.bf16.mxu1 %v4134_v36 }
   0xd   :  { %3390 = vmatpush3.bf16.msra.mxu1 %v4107_v11  ;;  %v4130_v33 = vld [vmem:[%s5145_s1 + $0xb8] sm:$0xff]   ;;  %605 = vmatprep.mubr.bf16.mxu0 %v4129_v32  ;;  %v4135_v37 = vld [vmem:[%s5145_s1 + $0x100] sm:$0xff]   ;;  %v4136_v38 = vld [vmem:[%s5145_s1 + $0x148] sm:$0xff]  }
   0xe   :  { %3391 = vmatprep.subr.bf16.mxu1 %v4110_v14  ;;  %v4137_v39 = vld [vmem:[%s5145_s1 + $0x108] sm:$0xff]   ;;  %v4141_v42 = vld [vmem:[%s5145_s1 + $0x150] sm:$0xff]   ;;  %v4146_v46 = vld [vmem:[%s5145_s1 + $0x158] sm:$0xff]  }
   0xf   :  { %3352 = vmatpush3.bf16.msra.mxu0 %v4109_v13  ;;  %v4138_v40 = vld [vmem:[%s5146_s0 + $0x34] ss:$24 sps:$4 sm:$0xff]   ;;  %v4140_v41 = vld [vmem:[%s5146_s0 + $0x30] ss:$24 sps:$4 sm:$0xff]   ;;  %v4147_v47 = vld [vmem:[%s5145_s1 + $0x118] sm:$0xff]  }
  0x10   :  { %3353 = vmatprep.subr.bf16.mxu0 %v4112_v16  ;;  %v4142_v43 = vld [vmem:[%s5146_s0 + $0x3c] ss:$24 sps:$4 sm:$0xff]   ;;  %v4145_v45 = vld [vmem:[%s5146_s0 + $0x38] ss:$24 sps:$4 sm:$0xff]   ;;  %v4151_v50 = vld [vmem:[%s5145_s1 + $0x160] sm:$0xff]  }
  0x11   :  { %3392 = vmatpush3.bf16.msra.mxu1 %v4111_v15  ;;  %v4144_v44 = vld [vmem:[%s5145_s1 + $0x110] sm:$0xff]   ;;  %v4148_v48 = vld [vmem:[%s5146_s0 + $0x64] ss:$24 sps:$4 sm:$0xff]   ;;  %v4150_v49 = vld [vmem:[%s5146_s0 + $0x60] ss:$24 sps:$4 sm:$0xff]  }
  0x12   :  { %3393 = vmatprep.subr.bf16.mxu1 %v4114_v18  ;;  %v4152_v51 = vld [vmem:[%s5146_s0 + $0x6c] ss:$24 sps:$4 sm:$0xff]   ;;  %v4155_v53 = vld [vmem:[%s5146_s0 + $0x68] ss:$24 sps:$4 sm:$0xff]   ;;  %v4161_v58 = vld [vmem:[%s5145_s1 + $0x170] sm:$0xff]  }
  0x13   :  { %3354 = vmatpush3.bf16.msra.mxu0 %v4113_v17  ;;  %v4154_v52 = vld [vmem:[%s5145_s1 + $0x120] sm:$0xff]   ;;  %v4156_v54 = vld [vmem:[%s5145_s1 + $0x168] sm:$0xff]   ;;  %v4162_v59 = vld [vmem:[%s5146_s0 + $0x9c] ss:$24 sps:$4 sm:$0xff]  }
  0x14   :  { %3355 = vmatprep.subr.bf16.mxu0 %v4116_v20  ;;  %v4157_v55 = vld [vmem:[%s5145_s1 + $0x128] sm:$0xff]   ;;  %v4164_v60 = vld [vmem:[%s5145_s1 + $0x130] sm:$0xff]   ;;  %v4166_v62 = vld [vmem:[%s5145_s1 + $0x178] sm:$0xff]   ;;  %v161_v20 = vlaneseq }
  0x15   :  { %3394 = vmatpush3.bf16.msra.mxu1 %v4115_v19  ;;  %v4158_v56 = vld [vmem:[%s5146_s0 + $0x94] ss:$24 sps:$4 sm:$0xff]   ;;  %v4160_v57 = vld [vmem:[%s5146_s0 + $0x90] ss:$24 sps:$4 sm:$0xff]   ;;  %v4167_v0 = vld [vmem:[%s5145_s1 + $0x138] sm:$0xff]  }
  0x16   :  { %3395 = vmatprep.subr.bf16.mxu1 %v4118_v22  ;;  %v4165_v61 = vld [vmem:[%s5146_s0 + $0x98] ss:$24 sps:$4 sm:$0xff]   ;;  %v4170_v63 = vld [vmem:[%s5146_s0 + $0x14] ss:$24 sps:$4 sm:$0xff]   ;;  %v4171_v2 = vld [vmem:[%s5146_s0 + $0x44] ss:$24 sps:$4 sm:$0xff]  }
  0x17   :  { %3356 = vmatpush3.bf16.msra.mxu0 %v4117_v21  ;;  %v4168_v1 = vld [vmem:[%s5146_s0 + $0x10] ss:$24 sps:$4 sm:$0xff]   ;;  %v4173_v3 = vld [vmem:[%s5146_s0 + $0x40] ss:$24 sps:$4 sm:$0xff]   ;;  %v4174_v4 = vld [vmem:[%s5146_s0 + $0x74] ss:$24 sps:$4 sm:$0xff]  }
  0x18   :  { %3357 = vmatprep.subr.bf16.mxu0 %v4120_v24  ;;  %v4176_v5 = vld [vmem:[%s5146_s0 + $0x70] ss:$24 sps:$4 sm:$0xff]   ;;  %v4177_v6 = vld [vmem:[%s5146_s0 + $0xa4] ss:$24 sps:$4 sm:$0xff]   ;;  %v4179_v7 = vld [vmem:[%s5146_s0 + $0xa0] ss:$24 sps:$4 sm:$0xff]  }
  0x19   :  { %3396 = vmatpush3.bf16.msra.mxu1 %v4119_v23  ;;  %v776_v8 = vld [vmem:[%s5147_s2] sm:$0xff]  ;;  %v777_v9 = vld [vmem:[%s5147_s2 + $0x8] sm:$0xff]  ;;  %v778_v11 = vld [vmem:[%s5147_s2 + $0x10] sm:$0xff]  ;;  %v4567_v21 = vshrl.u32 %v161_v20, 7  ;;  %s4267_s0 = smov 112  }
  0x1a   :  { %3397 = vmatprep.subr.bf16.mxu1 %v4122_v26  ;;  %v3863_v10 = vpack.c.bf16 %v777_v9, %v776_v8  ;;  %v779_v12 = vld [vmem:[%s5147_s2 + $0x18] sm:$0xff]  ;;  %v780_v14 = vld [vmem:[%s5147_s2 + $0x20] sm:$0xff]  ;;  %v781_v15 = vld [vmem:[%s5147_s2 + $0x28] sm:$0xff] }
  0x1b   :  { %3358 = vmatpush3.bf16.msra.mxu0 %v4121_v25  ;;  %v3867_v13 = vpack.c.bf16 %v779_v12, %v778_v11  ;;  %v3871_v16 = vpack.c.bf16 %v781_v15, %v780_v14  ;;  %v782_v17 = vld [vmem:[%s5147_s2 + $0x30] sm:$0xff]  ;;  %v783_v18 = vld [vmem:[%s5147_s2 + $0x38] sm:$0xff]  ;;  %v163_v22 = vsub.s32 0, %v4567_v21  ;;  %v4573_v23 = vld [vmem:[%s5148_s3] sm:$0xff] }
  0x1c   :  { %3359 = vmatprep.subr.bf16.mxu0 %v4124_v28  ;;  %v3875_v19 = vpack.c.bf16 %v783_v18, %v782_v17 }
  0x1d   :  { %3398 = vmatpush3.bf16.msra.mxu1 %v4123_v27  ;;  %v164_v25 = vrot.slane %v4573_v23, %v163_v22 }
  0x1e   :  { %3399 = vmatprep.subr.bf16.mxu1 %v4126_v30 }
  0x1f   :  { %3360 = vmatpush3.bf16.msra.mxu0 %v4125_v29 }
  0x20   :  { %3425 = vmatprep.subr.bf16.mxu0 %v4131_v34 }
  0x21   :  { %3400 = vmatpush3.bf16.msra.mxu1 %v4130_v33 }
  0x22   :  { %606 = vmatmul.mubr.bf16.vlgmr.msra.gmra.mrb[0].mxu0 %v4127_v31  ;;  %3864 = vmatprep.subr.bf16.mxu1 %v3863_v10 }
  0x23   :  { %3426 = vmatpush3.bf16.msra.mxu0 %v4135_v37  ;;  %613 = vmatprep.mubr.bf16.mxu0 %v4138_v40 }
  0x24   :  { %671 = vmatmul.mubr.bf16.vlgmr.msra.gmra.mrb[0].mxu1 %v4132_v35  ;;  %3427 = vmatprep.subr.bf16.mxu0 %v4136_v38 }
  0x25   :  { %678 = vmatprep.mubr.bf16.mxu1 %v4142_v43  ;;  %3866 = vmatpush3.bf16.msra.mxu1 %v3863_v10 }
  0x26   :  { %3868 = vmatprep.subr.bf16.mxu1 %v3867_v13 }
  0x27   :  { %3428 = vmatpush3.bf16.msra.mxu0 %v4137_v39 }
  0x28   :  { %3429 = vmatprep.subr.bf16.mxu0 %v4141_v42 }
  0x29   :  { %3870 = vmatpush3.bf16.msra.mxu1 %v3867_v13 }
  0x2a   :  { %614 = vmatmul.mubr.bf16.gmra.mrb[4].mxu0 %v4140_v41  ;;  %3872 = vmatprep.subr.bf16.mxu1 %v3871_v16 }
  0x2b   :  { %3430 = vmatpush3.bf16.msra.mxu0 %v4144_v44  ;;  %621 = vmatprep.mubr.bf16.mxu0 %v4148_v48 }
  0x2c   :  { %679 = vmatmul.mubr.bf16.gmra.mrb[4].mxu1 %v4145_v45  ;;  %3431 = vmatprep.subr.bf16.mxu0 %v4146_v46 }
  0x2d   :  { %686 = vmatprep.mubr.bf16.mxu1 %v4152_v51  ;;  %3874 = vmatpush3.bf16.msra.mxu1 %v3871_v16 }
  0x2e   :  { %3876 = vmatprep.subr.bf16.mxu1 %v3875_v19 }
  0x2f   :  { %3432 = vmatpush3.bf16.msra.mxu0 %v4147_v47 }
  0x30   :  { %3433 = vmatprep.subr.bf16.mxu0 %v4151_v50 }
  0x31   :  { %3878 = vmatpush3.bf16.msra.mxu1 %v3875_v19 }
  0x32   :  { %622 = vmatmul.mubr.bf16.gmra.mrb[8].mxu0 %v4150_v49 }
  0x33   :  { %3434 = vmatpush3.bf16.msra.mxu0 %v4154_v52  ;;  %629 = vmatprep.mubr.bf16.mxu0 %v4158_v56 }
  0x34   :  { %687 = vmatmul.mubr.bf16.gmra.mrb[8].mxu1 %v4155_v53  ;;  %3435 = vmatprep.subr.bf16.mxu0 %v4156_v54 }
  0x35   :  { %694 = vmatprep.mubr.bf16.mxu1 %v4162_v59 }
  0x37   :  { %3436 = vmatpush3.bf16.msra.mxu0 %v4157_v55 }
  0x38   :  { %3437 = vmatprep.subr.bf16.mxu0 %v4161_v58 }
  0x3a   :  { %630 = vmatmul.mubr.bf16.gmra.mrb[12].mxu0 %v4160_v57 }
  0x3b   :  { %735 = vmatprep.mubr.bf16.mxu0 %v4170_v63  ;;  %3438 = vmatpush3.bf16.msra.mxu0 %v4164_v60 }
  0x3c   :  { %695 = vmatmul.mubr.bf16.gmra.mrb[12].mxu1 %v4165_v61  ;;  %3439 = vmatprep.subr.bf16.mxu0 %v4166_v62 }
  0x3f   :  { %3440 = vmatpush3.bf16.msra.mxu0 %v4167_v0 }
  0x42   :  { %736 = vmatmul.mubr.bf16.vlgmr.msra.gmra.mrb[16].mxu0 %v4168_v1 }
  0x43   :  { %743 = vmatprep.mubr.bf16.mxu0 %v4171_v2 }
  0x4a   :  { %744 = vmatmul.mubr.bf16.gmra.mrb[20].mxu0 %v4173_v3 }
  0x4b   :  { %751 = vmatprep.mubr.bf16.mxu0 %v4174_v4 }
  0x52   :  { %752 = vmatmul.mubr.bf16.gmra.mrb[24].mxu0 %v4176_v5 }
  0x53   :  { %759 = vmatprep.mubr.bf16.mxu0 %v4177_v6 }
  0x5a   :  { %760 = vmatmul.mubr.bf16.gmra.mrb[28].mxu0 %v4179_v7 }
  0xf5   :  { %v3361_v24 = vpop.f32.mrb[0].mxu0 }
  0xf6   :  { %v3362_v26 = vpop.f32.mrb[1].mxu0 }
  0xf7   :  { %v3363_v27 = vadd.f32 %v3362_v26, %v3361_v24  ;;  %v3364_v28 = vpop.f32.mrb[2].mxu0  ;;  %v3401_v29 = vpop.f32.mrb[0].mxu1 }
  0xf8   :  { %v3365_v30 = vpop.f32.mrb[3].mxu0  ;;  %v3402_v33 = vpop.f32.mrb[1].mxu1 }
  0xf9   :  { %v608_v31 = vadd.f32 %v3363_v27, %v164_v25  ;;  %v3366_v32 = vadd.f32 %v3365_v30, %v3364_v28  ;;  %v3403_v34 = vadd.f32 %v3402_v33, %v3401_v29  ;;  %v3404_v35 = vpop.f32.mrb[2].mxu1 }
  0xfa   :  { %v3405_v37 = vpop.f32.mrb[3].mxu1 }
  0xfb   :  { %v611_v36 = vadd.f32 %v3366_v32, %v164_v25  ;;  %v673_v38 = vadd.f32 %v3403_v34, %v608_v31  ;;  %v3406_v39 = vadd.f32 %v3405_v37, %v3404_v35 }
  0xfd   :  { %v3367_v40 = vpop.f32.mrb[4].mxu0  ;;  %v676_v41 = vadd.f32 %v3406_v39, %v611_v36 }
  0xfe   :  { %v3368_v42 = vpop.f32.mrb[5].mxu0 }
  0xff   :  { %v3369_v43 = vadd.f32 %v3368_v42, %v3367_v40  ;;  %v3370_v44 = vpop.f32.mrb[6].mxu0  ;;  %v3407_v45 = vpop.f32.mrb[4].mxu1 }
 0x100   :  { %v3371_v46 = vpop.f32.mrb[7].mxu0  ;;  %v3408_v49 = vpop.f32.mrb[5].mxu1 }
 0x101   :  { %v616_v47 = vadd.f32 %v3369_v43, %v164_v25  ;;  %v3372_v48 = vadd.f32 %v3371_v46, %v3370_v44  ;;  %v3409_v50 = vadd.f32 %v3408_v49, %v3407_v45  ;;  %v3410_v51 = vpop.f32.mrb[6].mxu1 }
 0x102   :  { %v3411_v53 = vpop.f32.mrb[7].mxu1 }
 0x103   :  { %v619_v52 = vadd.f32 %v3372_v48, %v164_v25  ;;  %v681_v54 = vadd.f32 %v3409_v50, %v616_v47  ;;  %v3412_v55 = vadd.f32 %v3411_v53, %v3410_v51 }
 0x105   :  { %v3373_v56 = vpop.f32.mrb[8].mxu0  ;;  %v684_v57 = vadd.f32 %v3412_v55, %v619_v52 }
 0x106   :  { %v3374_v58 = vpop.f32.mrb[9].mxu0 }
 0x107   :  { %v3375_v59 = vadd.f32 %v3374_v58, %v3373_v56  ;;  %v3376_v60 = vpop.f32.mrb[10].mxu0  ;;  %v3413_v61 = vpop.f32.mrb[8].mxu1 }
 0x108   :  { %v3377_v62 = vpop.f32.mrb[11].mxu0  ;;  %v3414_v1 = vpop.f32.mrb[9].mxu1 }
 0x109   :  { %v624_v63 = vadd.f32 %v3375_v59, %v164_v25  ;;  %v3378_v0 = vadd.f32 %v3377_v62, %v3376_v60  ;;  %v3415_v2 = vadd.f32 %v3414_v1, %v3413_v61  ;;  %v3416_v3 = vpop.f32.mrb[10].mxu1 }
 0x10a   :  { %v3417_v5 = vpop.f32.mrb[11].mxu1 }
 0x10b   :  { %v627_v4 = vadd.f32 %v3378_v0, %v164_v25  ;;  %v689_v6 = vadd.f32 %v3415_v2, %v624_v63  ;;  %v3418_v7 = vadd.f32 %v3417_v5, %v3416_v3 }
 0x10d   :  { %v3379_v8 = vpop.f32.mrb[12].mxu0  ;;  %v692_v9 = vadd.f32 %v3418_v7, %v627_v4  ;;  %v786_v4 = vsub.s32 1, %v4567_v21 }
 0x10e   :  { %v3380_v10 = vpop.f32.mrb[13].mxu0 }
 0x10f   :  { %v3381_v11 = vadd.f32 %v3380_v10, %v3379_v8  ;;  %v3382_v12 = vpop.f32.mrb[14].mxu0  ;;  %v3419_v13 = vpop.f32.mrb[12].mxu1  ;;  %v4586_v5 = vrot.slane %v4573_v23, %v786_v4 }
 0x110   :  { %v3383_v14 = vpop.f32.mrb[15].mxu0  ;;  %v3420_v17 = vpop.f32.mrb[13].mxu1 }
 0x111   :  { %v632_v15 = vadd.f32 %v3381_v11, %v164_v25  ;;  %v3384_v16 = vadd.f32 %v3383_v14, %v3382_v12  ;;  %v3421_v18 = vadd.f32 %v3420_v17, %v3419_v13  ;;  %v3422_v19 = vpop.f32.mrb[14].mxu1 }
 0x112   :  { %v3423_v24 = vpop.f32.mrb[15].mxu1 }
 0x113   :  { %v635_v22 = vadd.f32 %v3384_v16, %v164_v25  ;;  %v697_v26 = vadd.f32 %v3421_v18, %v632_v15  ;;  %v3424_v27 = vadd.f32 %v3423_v24, %v3422_v19 }
 0x115   :  { %v700_v28 = vadd.f32 %v3424_v27, %v635_v22  ;;  %v3441_v29 = vpop.f32.mrb[16].mxu0 }
 0x116   :  { %v3442_v30 = vpop.f32.mrb[17].mxu0 }
 0x117   :  { %v3443_v31 = vadd.f32 %v3442_v30, %v3441_v29  ;;  %v3444_v32 = vpop.f32.mrb[18].mxu0 }
 0x118   :  { %v3445_v33 = vpop.f32.mrb[19].mxu0 }
 0x119   :  { %v738_v34 = vadd.f32 %v3443_v31, %v673_v38  ;;  %v3446_v35 = vadd.f32 %v3445_v33, %v3444_v32 }
 0x11b   :  { %v768_v36 = vmax.f32 %v738_v34, 0.0  ;;  %v741_v37 = vadd.f32 %v3446_v35, %v676_v41 }
 0x11d   :  { %v769_v39 = vmax.f32 %v741_v37, 0.0  ;;  %v3447_v40 = vpop.f32.mrb[20].mxu0  ;;  %3622 = vmatprep.mubr.msk.f32.mxu1 %vm788_vm0, %v768_v36 }
 0x11e   :  { %v3448_v42 = vpop.f32.mrb[21].mxu0 }
 0x11f   :  { %v3449_v25 = vadd.f32 %v3448_v42, %v3447_v40  ;;  %v3450_v43 = vpop.f32.mrb[22].mxu0  ;;  %3623 = vmatmul.mubr.msk.f32.vlgmr.msra.gmra.mrb[16].mxu1 %vm788_vm0, %v769_v39 }
 0x120   :  { %v3451_v44 = vpop.f32.mrb[23].mxu0 }
 0x121   :  { %v746_v45 = vadd.f32 %v3449_v25, %v681_v54  ;;  %v3452_v46 = vadd.f32 %v3451_v44, %v3450_v43 }
 0x123   :  { %v770_v47 = vmax.f32 %v746_v45, 0.0  ;;  %v749_v48 = vadd.f32 %v3452_v46, %v684_v57 }
 0x125   :  { %v771_v49 = vmax.f32 %v749_v48, 0.0  ;;  %v3453_v38 = vpop.f32.mrb[24].mxu0  ;;  %3625 = vmatprep.mubr.msk.f32.mxu1 %vm788_vm0, %v770_v47 }
 0x126   :  { %v3454_v50 = vpop.f32.mrb[25].mxu0 }
 0x127   :  { %v3455_v41 = vadd.f32 %v3454_v50, %v3453_v38  ;;  %v3456_v51 = vpop.f32.mrb[26].mxu0  ;;  %3626 = vmatmul.mubr.msk.f32.gmra.mrb[18].mxu1 %vm788_vm0, %v771_v49 }
 0x128   :  { %v3457_v52 = vpop.f32.mrb[27].mxu0 }
 0x129   :  { %v754_v53 = vadd.f32 %v3455_v41, %v689_v6  ;;  %v3458_v55 = vadd.f32 %v3457_v52, %v3456_v51 }
 0x12b   :  { %v772_v56 = vmax.f32 %v754_v53, 0.0  ;;  %v757_v58 = vadd.f32 %v3458_v55, %v692_v9 }
 0x12d   :  { %v773_v59 = vmax.f32 %v757_v58, 0.0  ;;  %v3459_v60 = vpop.f32.mrb[28].mxu0  ;;  %3628 = vmatprep.mubr.msk.f32.mxu1 %vm788_vm0, %v772_v56 }
 0x12e   :  { %v3460_v54 = vpop.f32.mrb[29].mxu0 }
 0x12f   :  { %v3461_v57 = vadd.f32 %v3460_v54, %v3459_v60  ;;  %v3462_v61 = vpop.f32.mrb[30].mxu0  ;;  %3629 = vmatmul.mubr.msk.f32.gmra.mrb[20].mxu1 %vm788_vm0, %v773_v59 }
 0x130   :  { %v3463_v62 = vpop.f32.mrb[31].mxu0 }
 0x131   :  { %v762_v63 = vadd.f32 %v3461_v57, %v697_v26  ;;  %v3464_v0 = vadd.f32 %v3463_v62, %v3462_v61 }
 0x133   :  { %v774_v1 = vmax.f32 %v762_v63, 0.0  ;;  %v765_v2 = vadd.f32 %v3464_v0, %v700_v28 }
 0x135   :  { %v775_v3 = vmax.f32 %v765_v2, 0.0  ;;  %3631 = vmatprep.mubr.msk.f32.mxu1 %vm788_vm0, %v774_v1 }
 0x137   :  { %3632 = vmatmul.mubr.msk.f32.gmra.mrb[22].mxu1 %vm788_vm0, %v775_v3 }
 0x1f2   :  { %v3624_v6 = vpop.f32.mrb[16].mxu1 }
 0x1f3   :  { %v879_v7 = vpop.f32.mrb[17].mxu1  ;;  %v885_v9 = vadd.f32 %v3624_v6, %v4586_v5 }
 0x1f4   :  { %v880_v8 = vadd.f32 %v879_v7, %v4586_v5 }
 0x1f5   :  { %v922_v12 = vsel %vm918_vm1, %v885_v9, 0.0 }
 0x1f6   :  { %v919_v10 = vsel %vm918_vm1, %v880_v8, 0.0 }
 0x1f7   :  { %920 = vadd.xlane.f32.xlu0 %v919_v10  ;;  %v4647_v10 = vld [vmem:[%s5149_s4 + $0x28] sm:$0xff] }
 0x1fa   :  { %v3627_v11 = vpop.f32.mrb[18].mxu1 }
 0x1fb   :  { %v889_v13 = vpop.f32.mrb[19].mxu1  ;;  %923 = vadd.xlane.f32.xlu0 %v922_v12  ;;  %v895_v15 = vadd.f32 %v3627_v11, %v4586_v5  ;;  %v4652_v11 = vld [vmem:[%s5149_s4 + $0x38] sm:$0xff] }
 0x1fc   :  { %v890_v14 = vadd.f32 %v889_v13, %v4586_v5  ;;  %v4656_v12 = vpack.i.bf16 %v4652_v11, %v4647_v10  ;;  %v4661_v13 = vld [vmem:[%s5149_s4 + $0x8] sm:$0xff] }
 0x1fd   :  { %v928_v18 = vsel %vm918_vm1, %v895_v15, 0.0 }
 0x1fe   :  { %v925_v16 = vsel %vm918_vm1, %v890_v14, 0.0 }
 0x1ff   :  { %926 = vadd.xlane.f32.xlu1 %v925_v16  ;;  %v35_v16 = vld [vmem:[%s5149_s4 + $0x10] sm:$0xff] }
 0x202   :  { %v3630_v17 = vpop.f32.mrb[20].mxu1 }
 0x203   :  { %v905_v19 = vadd.f32 %v3630_v17, %v4586_v5  ;;  %v899_v22 = vpop.f32.mrb[21].mxu1  ;;  %929 = vadd.xlane.f32.xlu1 %v928_v18  ;;  %v37_v18 = vld [vmem:[%s5149_s4 + $0x20] sm:$0xff] }
 0x204   :  { %v900_v24 = vadd.f32 %v899_v22, %v4586_v5 }
 0x205   :  { %v934_v26 = vsel %vm918_vm1, %v905_v19, 0.0 }
 0x206   :  { %v931_v27 = vsel %vm918_vm1, %v900_v24, 0.0 }
 0x207   :  { %935 = vadd.xlane.f32.xlu1 %v934_v26  ;;  %932 = vadd.xlane.f32.xlu0 %v931_v27  ;;  %v1038_v27 = vsub.s32 2, %v4567_v21 }
 0x20a   :  { %v3633_v28 = vpop.f32.mrb[22].mxu1 }
 0x20b   :  { %v915_v29 = vadd.f32 %v3633_v28, %v4586_v5  ;;  %v909_v30 = vpop.f32.mrb[23].mxu1 }
 0x20c   :  { %v910_v31 = vadd.f32 %v909_v30, %v4586_v5  ;;  %v4712_v30 = vld [vmem:[%s5150_s5 + $0x8] sm:$0xff] }
 0x20d   :  { %v940_v32 = vsel %vm918_vm1, %v915_v29, 0.0 }
 0x20e   :  { %941 = vadd.xlane.f32.xlu1 %v940_v32  ;;  %v937_v33 = vsel %vm918_vm1, %v910_v31, 0.0 }
 0x20f   :  { %938 = vadd.xlane.f32.xlu0 %v937_v33 }
 0x284   :  { %v921_v34 = vpop.xlane.xlu0 %920 }
 0x285   :  { %v944_v35 = vmul.f32 0.03125, %v921_v34 }
 0x287   :  { %v4604_v36 = vsub.f32 %v880_v8, %v944_v35 }
 0x288   :  { %v924_v37 = vpop.xlane.xlu0 %923 }
 0x289   :  { %v945_v39 = vmul.f32 0.03125, %v924_v37  ;;  %v960_v40 = vmul.f32 %v4604_v36, %v4604_v36 }
 0x28b   :  { %v4608_v42 = vsub.f32 %v885_v9, %v945_v39  ;;  %v968_v25 = vsel %vm918_vm1, %v960_v40, 0.0 }
 0x28c   :  { %v927_v43 = vpop.xlane.xlu1 %926  ;;  %969 = vadd.xlane.f32.xlu0 %v968_v25 }
 0x28d   :  { %v946_v44 = vmul.f32 0.03125, %v927_v43  ;;  %v961_v45 = vmul.f32 %v4608_v42, %v4608_v42 }
 0x28f   :  { %v4613_v46 = vsub.f32 %v890_v14, %v946_v44  ;;  %v971_v47 = vsel %vm918_vm1, %v961_v45, 0.0  ;;  %v4666_v14 = vld [vmem:[%s5149_s4 + $0x18] sm:$0xff] }
 0x290   :  { %v930_v48 = vpop.xlane.xlu1 %929  ;;  %972 = vadd.xlane.f32.xlu1 %v971_v47  ;;  %v4678_v17 = vpack.i.bf16 %v4666_v14, %v4661_v13 }
 0x291   :  { %v947_v49 = vmul.f32 0.03125, %v930_v48  ;;  %v962_v38 = vmul.f32 %v4613_v46, %v4613_v46 }
 0x293   :  { %v4618_v50 = vsub.f32 %v895_v15, %v947_v49  ;;  %v974_v41 = vsel %vm918_vm1, %v962_v38, 0.0  ;;  %v33_v15 = vld [vmem:[%s5149_s4] sm:$0xff] }
 0x294   :  { %v936_v51 = vpop.xlane.xlu1 %935  ;;  %975 = vadd.xlane.f32.xlu0 %v974_v41  ;;  %v933_v52 = vpop.xlane.xlu0 %932  ;;  %v4688_v22 = vpack.i.bf16 %v35_v16, %v33_v15 }
 0x295   :  { %v949_v53 = vmul.f32 0.03125, %v936_v51  ;;  %v948_v55 = vmul.f32 0.03125, %v933_v52  ;;  %v963_v56 = vmul.f32 %v4618_v50, %v4618_v50 }
 0x297   :  { %v4623_v58 = vsub.f32 %v905_v19, %v949_v53  ;;  %v4625_v59 = vsub.f32 %v900_v24, %v948_v55  ;;  %v977_v60 = vsel %vm918_vm1, %v963_v56, 0.0  ;;  %v39_v19 = vld [vmem:[%s5149_s4 + $0x30] sm:$0xff]  ;;  %v3887_v24 = vpack.c.bf16 %v35_v16, %v33_v15  ;;  %s4270_s4 = smov 88  }
 0x298   :  { %978 = vadd.xlane.f32.xlu1 %v977_v60  ;;  %v4692_v26 = vpack.i.bf16 %v39_v19, %v37_v18  ;;  %v3891_v28 = vpack.c.bf16 %v39_v19, %v37_v18 }
 0x299   :  { %v965_v54 = vmul.f32 %v4623_v58, %v4623_v58  ;;  %v964_v57 = vmul.f32 %v4625_v59, %v4625_v59  ;;  %3888 = vmatprep.subr.bf16.mxu0 %v3887_v24 }
 0x29a   :  { %3890 = vmatpush3.bf16.msra.mxu0 %v3887_v24 }
 0x29b   :  { %v942_v61 = vpop.xlane.xlu1 %941  ;;  %v983_v62 = vsel %vm918_vm1, %v965_v54, 0.0  ;;  %v980_v63 = vsel %vm918_vm1, %v964_v57, 0.0  ;;  %3892 = vmatprep.subr.bf16.mxu0 %v3891_v28 }
 0x29c   :  { %v951_v0 = vmul.f32 0.03125, %v942_v61  ;;  %984 = vadd.xlane.f32.xlu1 %v983_v62  ;;  %981 = vadd.xlane.f32.xlu0 %v980_v63  ;;  %v939_v1 = vpop.xlane.xlu0 %938 }
 0x29d   :  { %v950_v2 = vmul.f32 0.03125, %v939_v1 }
 0x29e   :  { %v4634_v3 = vsub.f32 %v915_v29, %v951_v0  ;;  %3894 = vmatpush3.bf16.msra.mxu0 %v3891_v28  ;;  %v4707_v29 = vld [vmem:[%s5150_s5] sm:$0xff]  ;;  %s4274_s5 = smov 16  }
 0x29f   :  { %v4636_v4 = vsub.f32 %v910_v31, %v950_v2  ;;  %3662 = vmatprep.mubr.msk.f32.mxu0 %vm918_vm1, %v4707_v29 }
 0x2a0   :  { %v967_v6 = vmul.f32 %v4634_v3, %v4634_v3 }
 0x2a1   :  { %v966_v7 = vmul.f32 %v4636_v4, %v4636_v4  ;;  %3663 = vmatmul.mubr.msk.f32.vlgmr.msra.gmra.mrb[32].mxu0 %vm918_vm1, %v4712_v30 }
 0x2a2   :  { %v989_v8 = vsel %vm918_vm1, %v967_v6, 0.0 }
 0x2a3   :  { %990 = vadd.xlane.f32.xlu1 %v989_v8  ;;  %v986_v9 = vsel %vm918_vm1, %v966_v7, 0.0 }
 0x2a4   :  { %987 = vadd.xlane.f32.xlu0 %v986_v9 }
 0x2b4   :  { %4042 = vrot.lane.b32.xlu1 %v4656_v12, %s4261_s28 }
 0x2b8   :  { %1025 = vrot.lane.b32.xlu1 %v4586_v5, %s4262_s15  ;;  %v4700_v5 = vrot.slane %v4573_v23, %v1038_v27 }
 0x2ba   :  { %4037 = vrot.lane.b32.xlu0 %v4678_v17, %s4261_s28 }
 0x2bc   :  { %4047 = vrot.lane.b32.xlu1 %v4688_v22, %s4262_s15 }
 0x2be   :  { %4052 = vrot.lane.b32.xlu0 %v4692_v26, %s4262_s15 }
 0x2c0   :  { %1245 = vrot.lane.b32.xlu1 %v4700_v5, %s4262_s15 }
 0x319   :  { %v970_v31 = vpop.xlane.xlu0 %969 }
 0x31a   :  { %v992_v33 = vmul.f32 0.03125, %v970_v31 }
 0x31c   :  { %v1000_v39 = vadd.f32 1e-05, %v992_v33 }
 0x31d   :  { %v973_v32 = vpop.xlane.xlu1 %972 }
 0x31e   :  { %v993_v34 = vmul.f32 0.03125, %v973_v32  ;;  %4180 = vrsqrt.f32 %v1000_v39 }
 0x320   :  { %v1001_v40 = vadd.f32 1e-05, %v993_v34 }
 0x321   :  { %v976_v35 = vpop.xlane.xlu0 %975 }
 0x322   :  { %v994_v37 = vmul.f32 0.03125, %v976_v35  ;;  %4182 = vrsqrt.f32 %v1001_v40 }
 0x324   :  { %v1002_v25 = vadd.f32 1e-05, %v994_v37 }
 0x325   :  { %v979_v43 = vpop.xlane.xlu1 %978 }
 0x326   :  { %v995_v44 = vmul.f32 0.03125, %v979_v43  ;;  %4184 = vrsqrt.f32 %v1002_v25 }
 0x328   :  { %v1003_v45 = vadd.f32 1e-05, %v995_v44  ;;  %v4181_v53 = vpop.eup %4180 }
 0x329   :  { %v985_v47 = vpop.xlane.xlu1 %984  ;;  %v982_v48 = vpop.xlane.xlu0 %981  ;;  %v1016_v15 = vmul.f32 %v4181_v53, %v4604_v36 }
 0x32a   :  { %4186 = vrsqrt.f32 %v1003_v45  ;;  %v997_v49 = vmul.f32 0.03125, %v985_v47  ;;  %v996_v38 = vmul.f32 0.03125, %v982_v48 }
 0x32c   :  { %v1005_v41 = vadd.f32 1e-05, %v997_v49  ;;  %v1004_v51 = vadd.f32 1e-05, %v996_v38  ;;  %v4183_v60 = vpop.eup %4182 }
 0x32d   :  { %v1017_v9 = vmul.f32 %v4183_v60, %v4608_v42 }
 0x32e   :  { %4188 = vrsqrt.f32 %v1005_v41 }
 0x32f   :  { %4190 = vrsqrt.f32 %v1004_v51 }
 0x330   :  { %v991_v52 = vpop.xlane.xlu1 %990  ;;  %v4185_v57 = vpop.eup %4184 }
 0x331   :  { %v999_v55 = vmul.f32 0.03125, %v991_v52  ;;  %v988_v56 = vpop.xlane.xlu0 %987  ;;  %v1018_v16 = vmul.f32 %v4185_v57, %v4613_v46  ;;  %v4263_v52 = vmov 0.0|0.0  }
 0x332   :  { %v998_v54 = vmul.f32 0.03125, %v988_v56 }
 0x333   :  { %v1007_v61 = vadd.f32 1e-05, %v999_v55 }
 0x334   :  { %v4187_v62 = vpop.eup %4186  ;;  %v1006_v63 = vadd.f32 1e-05, %v998_v54  ;;  %v4043_v0 = vpop.permute.xlu1 %4042 }
 0x335   :  { %4192 = vrsqrt.f32 %v1007_v61  ;;  %v4045_v1 = vunpack.i.h.bf16 %v4043_v0  ;;  %v4044_v2 = vunpack.i.l.bf16 %v4043_v0  ;;  %v4038_v6 = vpop.permute.xlu0 %4037  ;;  %v1019_v18 = vmul.f32 %v4187_v62, %v4618_v50 }
 0x336   :  { %4194 = vrsqrt.f32 %v1006_v63  ;;  %v4040_v7 = vunpack.i.h.bf16 %v4038_v6  ;;  %v4039_v8 = vunpack.i.l.bf16 %v4038_v6 }
 0x337   :  { %v3883_v24 = vpack.c.bf16 %v4045_v1, %v4044_v2 }
 0x338   :  { %v4189_v19 = vpop.eup %4188  ;;  %v3879_v27 = vpack.c.bf16 %v4040_v7, %v4039_v8  ;;  %v1026_v28 = vpop.permute.xlu1 %1025 }
 0x339   :  { %v4191_v31 = vpop.eup %4190  ;;  %v1028_v32 = vmul.f32 %v1026_v28, %v1016_v15  ;;  %v1029_v33 = vmul.f32 %v1026_v28, %v1017_v9  ;;  %v1030_v34 = vmul.f32 %v1026_v28, %v1018_v16  ;;  %v1031_v35 = vmul.f32 %v1026_v28, %v1019_v18  ;;  %v4053_v43 = vpop.permute.xlu0 %4052 }
 0x33a   :  { %3880 = vmatprep.subr.bf16.mxu1 %v3879_v27  ;;  %v1020_v37 = vmul.f32 %v4191_v31, %v4625_v59  ;;  %v1021_v42 = vmul.f32 %v4189_v19, %v4623_v58  ;;  %v4055_v38 = vunpack.i.h.bf16 %v4053_v43  ;;  %v4054_v41 = vunpack.i.l.bf16 %v4053_v43 }
 0x33b   :  { %3882 = vmatpush3.bf16.msra.mxu1 %v3879_v27  ;;  %v1040_v36 = vadd.f32 %v4700_v5, %v1028_v32  ;;  %v1041_v46 = vadd.f32 %v4700_v5, %v1029_v33  ;;  %v1042_v50 = vadd.f32 %v4700_v5, %v1030_v34  ;;  %v1043_v39 = vadd.f32 %v4700_v5, %v1031_v35 }
 0x33c   :  { %3884 = vmatprep.subr.bf16.mxu1 %v3883_v24  ;;  %v4048_v40 = vpop.permute.xlu1 %4047  ;;  %v1032_v25 = vmul.f32 %v1026_v28, %v1020_v37  ;;  %v1033_v44 = vmul.f32 %v1026_v28, %v1021_v42  ;;  %v3899_v60 = vpack.c.bf16 %v4055_v38, %v4054_v41  ;;  %v1331_v19 = vsub.s32 3, %v4567_v21 }
 0x33d   :  { %3642 = vmatprep.mubr.msk.f32.mxu1 %vm918_vm1, %v1040_v36  ;;  %v4050_v45 = vunpack.i.h.bf16 %v4048_v40  ;;  %v4049_v59 = vunpack.i.l.bf16 %v4048_v40  ;;  %1194 = vst.msk [vmem:[%s5151_s9 + $0x8] sm:$0xff] %vm918_vm1, %v1041_v46  ;;  %1193 = vst.msk [vmem:[%s5151_s9] sm:$0xff] %vm918_vm1, %v1040_v36  ;;  %v1508_v43 = vsub.s32 6, %v4567_v21 }
 0x33e   :  { %1195 = vst.msk [vmem:[%s5151_s9 + $0x10] sm:$0xff] %vm918_vm1, %v1042_v50  ;;  %1196 = vst.msk [vmem:[%s5151_s9 + $0x18] sm:$0xff] %vm918_vm1, %v1043_v39  ;;  %v1044_v58 = vadd.f32 %v4700_v5, %v1032_v25  ;;  %v1045_v47 = vadd.f32 %v4700_v5, %v1033_v44  ;;  %v1332_v31 = vrot.slane %v4573_v23, %v1331_v19 }
 0x33f   :  { %v4193_v48 = vpop.eup %4192  ;;  %3886 = vmatpush3.bf16.msra.mxu1 %v3883_v24  ;;  %v3896_v49 = vpack.c.bf16 %v4050_v45, %v4049_v59  ;;  %v1509_v44 = vrot.slane %v4573_v23, %v1508_v43 }
 0x340   :  { %v4195_v51 = vpop.eup %4194  ;;  %3895 = vmatprep.subr.bf16.mxu1 %v4263_v52  ;;  %v1023_v53 = vmul.f32 %v4193_v48, %v4634_v3  ;;  %1197 = vst.msk [vmem:[%s5151_s9 + $0x20] sm:$0xff] %vm918_vm1, %v1044_v58  ;;  %1198 = vst.msk [vmem:[%s5151_s9 + $0x28] sm:$0xff] %vm918_vm1, %v1045_v47 }
 0x341   :  { %v1022_v55 = vmul.f32 %v4195_v51, %v4636_v4  ;;  %v4265_v4 = vmov 0.0  }
 0x342   :  { %3643 = vmatmul.mubr.msk.f32.vlgmr.msra.gmra.mrb[24].mxu1 %vm918_vm1, %v1041_v46  ;;  %v1035_v56 = vmul.f32 %v1026_v28, %v1023_v53  ;;  %3178 = vst [vmem:[%s5153_s8 + $0x8] sm:$0xff] %v4265_v4  ;;  %3177 = vst [vmem:[%s5153_s8] sm:$0xff] %v4265_v4 }
 0x343   :  { %3645 = vmatprep.mubr.msk.f32.mxu1 %vm918_vm1, %v1042_v50  ;;  %v1034_v54 = vmul.f32 %v1026_v28, %v1022_v55  ;;  %3897 = vmatpush3.bf16.msra.mxu1 %v3896_v49 }
 0x344   :  { %v1047_v3 = vadd.f32 %v4700_v5, %v1035_v56  ;;  %3898 = vmatprep.subr.bf16.mxu1 %v4263_v52 }
 0x345   :  { %v1046_v57 = vadd.f32 %v4700_v5, %v1034_v54  ;;  %v1246_v5 = vpop.permute.xlu1 %1245 }
 0x346   :  { %3646 = vmatmul.mubr.msk.f32.gmra.mrb[26].mxu1 %vm918_vm1, %v1043_v39  ;;  %1200 = vst.msk [vmem:[%s5151_s9 + $0x38] sm:$0xff] %vm918_vm1, %v1047_v3 }
 0x347   :  { %3648 = vmatprep.mubr.msk.f32.mxu1 %vm918_vm1, %v1044_v58  ;;  %3900 = vmatpush3.bf16.msra.mxu1 %v3899_v60  ;;  %1199 = vst.msk [vmem:[%s5151_s9 + $0x30] sm:$0xff] %vm918_vm1, %v1046_v57 }
 0x34a   :  { %3649 = vmatmul.mubr.msk.f32.gmra.mrb[28].mxu1 %vm918_vm1, %v1045_v47 }
 0x34b   :  { %3651 = vmatprep.mubr.msk.f32.mxu1 %vm918_vm1, %v1046_v57 }
 0x34e   :  { %3652 = vmatmul.mubr.msk.f32.gmra.mrb[30].mxu1 %vm918_vm1, %v1047_v3 }
 0x34f   :  { %3673 = vmatprep.mubr.msk.f32.mxu1 %vm4264_vm2, %v4265_v4 }
 0x352   :  { %3674 = vmatmul.mubr.msk.f32.vlgmr.msra.gmra.mrb[32].mxu1 %vm918_vm1, %v1040_v36 }
 0x374   :  { %v3664_v61 = vpop.f32.mrb[32].mxu0 }
 0x375   :  { %v1320_v62 = vpop.f32.mrb[33].mxu0  ;;  %v1326_v63 = vadd.f32 %v3664_v61, %v1246_v5 }
 0x376   :  { %v1321_v0 = vadd.f32 %v1320_v62, %v1246_v5 }
 0x377   :  { %1620 = vrot.lane.b32.xlu0 %v1326_v63, %s4266_s12 }
 0x378   :  { %1618 = vrot.lane.b32.xlu1 %v1321_v0, %s4266_s12  ;;  %3678 = vmatprep.mubr.msk.f32.mxu1 %vm1419_vm3, %v1321_v0 }
 0x3e9   :  { %v1621_v37 = vpop.permute.xlu0 %1620 }
 0x3ea   :  { %v1619_v7 = vpop.permute.xlu1 %1618 }
 0x3eb   :  { %3688 = vmatprep.mubr.msk.f32.mxu0 %vm1419_vm3, %v1619_v7 }
 0x415   :  { %v4777_v1 = vpop.f32.mrb[24].mxu1 }
 0x416   :  { %v4779_v2 = vpop.f32.mrb[25].mxu1 }
 0x417   :  { %v4076_v6 = vpack.i.bf16 %v4777_v1, %v4779_v2 }
 0x419   :  { %v4784_v8 = vpop.f32.mrb[26].mxu1 }
 0x41a   :  { %v4786_v9 = vpop.f32.mrb[27].mxu1 }
 0x41b   :  { %v4081_v15 = vpack.i.bf16 %v4784_v8, %v4786_v9 }
 0x41d   :  { %v4790_v16 = vpop.f32.mrb[28].mxu1 }
 0x41e   :  { %v4792_v18 = vpop.f32.mrb[29].mxu1 }
 0x41f   :  { %v4086_v24 = vpack.i.bf16 %v4790_v16, %v4792_v18 }
 0x421   :  { %v4797_v27 = vpop.f32.mrb[30].mxu1 }
 0x422   :  { %v4799_v28 = vpop.f32.mrb[31].mxu1 }
 0x423   :  { %v4091_v32 = vpack.i.bf16 %v4797_v27, %v4799_v28 }
 0x425   :  { %v1415_v33 = vpop.f32.mrb[32].mxu1 }
 0x426   :  { %v4804_v34 = vadd.f32 %v1415_v33, %v1332_v31  ;;  %v3675_v35 = vpop.f32.mrb[33].mxu1 }
 0x428   :  { %1819 = vrot.lane.b32.xlu1 %v4804_v34, %s4267_s0  ;;  %1622 = vrot.lane.b32.xlu0 %v4804_v34, %s4266_s12 }
 0x429   :  { %3676 = vmatprep.subr.msk.mxu1 %vm1419_vm3, %v4804_v34 }
 0x42a   :  { %3677 = vmatpush3.xpose.msk.msra.mxu1 %vm1419_vm3, %v4804_v34 }
 0x42c   :  { %1817 = vrot.lane.b32.xlu1 %v1326_v63, %s4267_s0  ;;  %1815 = vrot.lane.b32.xlu0 %v1321_v0, %s4267_s0 }
 0x42d   :  { %3679 = vmatmul.mubr.msk.f32.vlgmr.msra.gmra.mrb[34].mxu1 %vm1419_vm3, %v1326_v63 }
 0x430   :  { %2012 = vrot.lane.b32.xlu1 %v1321_v0, %s4268_s13  ;;  %2016 = vrot.lane.b32.xlu0 %v4804_v34, %s4268_s13 }
 0x434   :  { %2014 = vrot.lane.b32.xlu0 %v1326_v63, %s4268_s13 }
 0x49a   :  { %v1820_v42 = vpop.permute.xlu1 %1819  ;;  %v1623_v36 = vpop.permute.xlu0 %1622 }
 0x49b   :  { %3686 = vmatprep.subr.msk.mxu0 %vm1419_vm3, %v1623_v36 }
 0x49c   :  { %3687 = vmatpush3.xpose.msk.msra.mxu0 %vm1419_vm3, %v1623_v36 }
 0x49d   :  { %3696 = vmatprep.subr.msk.mxu0 %vm1419_vm3, %v1820_v42 }
 0x49e   :  { %v1818_v46 = vpop.permute.xlu1 %1817  ;;  %v1816_v50 = vpop.permute.xlu0 %1815 }
 0x49f   :  { %3689 = vmatmul.mubr.msk.f32.vlgmr.msra.gmra.mrb[34].mxu0 %vm1419_vm3, %v1621_v37 }
 0x4a0   :  { %3697 = vmatpush3.xpose.msk.msra.mxu0 %vm1419_vm3, %v1820_v42  ;;  %3698 = vmatprep.mubr.msk.f32.mxu0 %vm1419_vm3, %v1816_v50 }
 0x4a2   :  { %v2013_v39 = vpop.permute.xlu1 %2012  ;;  %v2017_v40 = vpop.permute.xlu0 %2016 }
 0x4a3   :  { %3699 = vmatmul.mubr.msk.f32.vlgmr.msra.gmra.mrb[36].mxu0 %vm1419_vm3, %v1818_v46  ;;  %3706 = vmatprep.subr.msk.mxu0 %vm1419_vm3, %v2017_v40 }
 0x4a4   :  { %3707 = vmatpush3.xpose.msk.msra.mxu0 %vm1419_vm3, %v2017_v40  ;;  %3708 = vmatprep.mubr.msk.f32.mxu0 %vm1419_vm3, %v2013_v39 }
 0x4a6   :  { %v2015_v25 = vpop.permute.xlu0 %2014 }
 0x4a7   :  { %3709 = vmatmul.mubr.msk.f32.vlgmr.msra.gmra.mrb[38].mxu0 %vm1419_vm3, %v2015_v25 }
 0x500   :  { %v3680_v45 = vpop.f32.mrb[34].mxu1 }
 0x501   :  { %v1505_v59 = vmul.f32 0.35355338, %v3680_v45  ;;  %v1495_v58 = vpop.f32.mrb[35].mxu1 }
 0x502   :  { %v1504_v47 = vmul.f32 0.35355338, %v1495_v58 }
 0x503   :  { %v1511_v48 = vadd.f32 %v1509_v44, %v1505_v59 }
 0x504   :  { %v1510_v49 = vadd.f32 %v1509_v44, %v1504_v47 }
 0x505   :  { %v1515_v38 = vsel %vm1419_vm3, %v1511_v48, -inf }
 0x506   :  { %1516 = vmax.xlane.f32.xlu0 %v1515_v38  ;;  %v1512_v41 = vsel %vm1419_vm3, %v1510_v49, -inf }
 0x507   :  { %1513 = vmax.xlane.f32.xlu1 %v1512_v41 }
 0x572   :  { %v3690_v51 = vpop.f32.mrb[34].mxu0 }
 0x573   :  { %v1706_v52 = vmul.f32 0.35355338, %v3690_v51  ;;  %v1696_v53 = vpop.f32.mrb[35].mxu0 }
 0x574   :  { %v1705_v55 = vmul.f32 0.35355338, %v1696_v53 }
 0x575   :  { %v1708_v23 = vadd.f32 %v1706_v52, %v1509_v44 }
 0x576   :  { %v3700_v56 = vpop.f32.mrb[36].mxu0  ;;  %v1707_v60 = vadd.f32 %v1705_v55, %v1509_v44 }
 0x577   :  { %v1893_v54 = vpop.f32.mrb[37].mxu0  ;;  %v1903_v3 = vmul.f32 0.35355338, %v3700_v56  ;;  %v1712_v0 = vsel %vm1419_vm3, %v1708_v23, -inf }
 0x578   :  { %v1902_v57 = vmul.f32 0.35355338, %v1893_v54  ;;  %v1709_v5 = vsel %vm1419_vm3, %v1707_v60, -inf }
 0x579   :  { %1710 = vmax.xlane.f32.xlu0 %v1709_v5  ;;  %v1905_v33 = vadd.f32 %v1903_v3, %v1509_v44 }
 0x57a   :  { %v3710_v61 = vpop.f32.mrb[38].mxu0  ;;  %v1904_v62 = vadd.f32 %v1902_v57, %v1509_v44 }
 0x57b   :  { %v2090_v63 = vpop.f32.mrb[39].mxu0  ;;  %v2100_v7 = vmul.f32 0.35355338, %v3710_v61  ;;  %v1909_v37 = vsel %vm1419_vm3, %v1905_v33, -inf }
 0x57c   :  { %v2099_v19 = vmul.f32 0.35355338, %v2090_v63  ;;  %v1906_v31 = vsel %vm1419_vm3, %v1904_v62, -inf }
 0x57d   :  { %1713 = vmax.xlane.f32.xlu0 %v1712_v0  ;;  %1907 = vmax.xlane.f32.xlu1 %v1906_v31  ;;  %v2102_v36 = vadd.f32 %v2100_v7, %v1509_v44 }
 0x57e   :  { %v4832_v35 = vadd.f32 %v2099_v19, %v1509_v44 }
 0x57f   :  { %v2106_v46 = vsel %vm1419_vm3, %v2102_v36, -inf }
 0x580   :  { %v2103_v42 = vsel %vm1419_vm3, %v4832_v35, -inf }
 0x581   :  { %1910 = vmax.xlane.f32.xlu0 %v1909_v37  ;;  %2104 = vmax.xlane.f32.xlu1 %v2103_v42 }
 0x585   :  { %2107 = vmax.xlane.f32.xlu0 %v2106_v46 }
 0x592   :  { %1534 = vrot.lane.b32.xlu1 %v4804_v34, %s4262_s15 }
 0x593   :  { %v1517_v50 = vpop.xlane.xlu0 %1516 }
 0x594   :  { %v1519_v39 = vsub.f32 %v1511_v48, %v1517_v50  ;;  %v1514_v25 = vpop.xlane.xlu1 %1513 }
 0x595   :  { %v1518_v43 = vsub.f32 %v1510_v49, %v1514_v25 }
 0x596   :  { %v1522_v40 = vmul.f32 1.442695, %v1519_v39 }
 0x597   :  { %v1520_v58 = vmul.f32 1.442695, %v1518_v43 }
 0x598   :  { %4196 = vpow2.f32 %v1522_v40 }
 0x599   :  { %4198 = vpow2.f32 %v1520_v58 }
 0x5a2   :  { %v4197_v45 = vpop.eup %4196 }
 0x5a3   :  { %v1527_v59 = vsel %vm1419_vm3, %v4197_v45, 0.0  ;;  %v4199_v44 = vpop.eup %4198 }
 0x5a4   :  { %1528 = vadd.xlane.f32.xlu0 %v1527_v59  ;;  %v1524_v47 = vsel %vm1419_vm3, %v4199_v44, 0.0 }
 0x5b6   :  { %1525 = vadd.xlane.f32.xlu1 %v1524_v47 }
 0x606   :  { %v1711_v38 = vpop.xlane.xlu0 %1710 }
 0x607   :  { %v1715_v41 = vsub.f32 %v1707_v60, %v1711_v38 }
 0x609   :  { %v1717_v51 = vmul.f32 1.442695, %v1715_v41 }
 0x60a   :  { %v1714_v52 = vpop.xlane.xlu0 %1713  ;;  %v1908_v53 = vpop.xlane.xlu1 %1907 }
 0x60b   :  { %4200 = vpow2.f32 %v1717_v51  ;;  %v1716_v48 = vsub.f32 %v1708_v23, %v1714_v52  ;;  %v1912_v55 = vsub.f32 %v1904_v62, %v1908_v53 }
 0x60d   :  { %v1719_v56 = vmul.f32 1.442695, %v1716_v48  ;;  %v1914_v49 = vmul.f32 1.442695, %v1912_v55 }
 0x60e   :  { %v1911_v54 = vpop.xlane.xlu0 %1910  ;;  %v2105_v3 = vpop.xlane.xlu1 %2104 }
 0x60f   :  { %4202 = vpow2.f32 %v1719_v56  ;;  %v1913_v57 = vsub.f32 %v1905_v33, %v1911_v54  ;;  %v2109_v50 = vsub.f32 %v4832_v35, %v2105_v3 }
 0x610   :  { %4204 = vpow2.f32 %v1914_v49 }
 0x611   :  { %v1916_v5 = vmul.f32 1.442695, %v1913_v57  ;;  %v2111_v39 = vmul.f32 1.442695, %v2109_v50 }
 0x612   :  { %v2108_v61 = vpop.xlane.xlu0 %2107  ;;  %v1535_v63 = vpop.permute.xlu1 %1534 }
 0x613   :  { %4206 = vpow2.f32 %v1916_v5  ;;  %v2110_v0 = vsub.f32 %v2102_v36, %v2108_v61  ;;  %3681 = vmatprep.subr.mxu1 %v1535_v63 }
 0x614   :  { %3682 = vmatpush3.msra.mxu1 %v1535_v63 }
 0x615   :  { %v4201_v60 = vpop.eup %4200  ;;  %v2113_v7 = vmul.f32 1.442695, %v2110_v0 }
 0x616   :  { %v1721_v19 = vsel %vm1419_vm3, %v4201_v60, 0.0 }
 0x617   :  { %4208 = vpow2.f32 %v2113_v7  ;;  %1722 = vadd.xlane.f32.xlu1 %v1721_v19 }
 0x618   :  { %4210 = vpow2.f32 %v2111_v39 }
 0x619   :  { %v4203_v23 = vpop.eup %4202 }
 0x61a   :  { %v4205_v62 = vpop.eup %4204  ;;  %v1724_v31 = vsel %vm1419_vm3, %v4203_v23, 0.0 }
 0x61b   :  { %1725 = vadd.xlane.f32.xlu0 %v1724_v31  ;;  %v1918_v33 = vsel %vm1419_vm3, %v4205_v62, 0.0 }
 0x61c   :  { %1919 = vadd.xlane.f32.xlu1 %v1918_v33 }
 0x61d   :  { %v4207_v37 = vpop.eup %4206 }
 0x61e   :  { %v1921_v42 = vsel %vm1419_vm3, %v4207_v37, 0.0 }
 0x61f   :  { %1922 = vadd.xlane.f32.xlu0 %v1921_v42 }
 0x621   :  { %v4846_v36 = vpop.eup %4208 }
 0x622   :  { %v2118_v46 = vsel %vm1419_vm3, %v4846_v36, 0.0  ;;  %v4211_v43 = vpop.eup %4210 }
 0x623   :  { %2119 = vadd.xlane.f32.xlu0 %v2118_v46  ;;  %v2115_v41 = vsel %vm1419_vm3, %v4211_v43, 0.0 }
 0x62d   :  { %1928 = vrot.lane.b32.xlu1 %v4804_v34, %s4269_s14 }
 0x631   :  { %v1529_v40 = vpop.xlane.xlu0 %1528 }
 0x632   :  { %4212 = vrcp.f32 %v1529_v40 }
 0x639   :  { %1731 = vrot.lane.b32.xlu0 %v4804_v34, %s4270_s4 }
 0x63c   :  { %v4213_v59 = vpop.eup %4212 }
 0x63d   :  { %v1533_v38 = vmul.f32 %v4213_v59, %v4197_v45  ;;  %4062 = vrot.lane.b32.xlu0 %v4692_v26, %s4272_s17  ;;  %v3913_v59 = vpack.c.bf16 %v4652_v11, %v4647_v10  ;;  %v4899_v10 = vld [vmem:[%s5152_s6 + $0x18] sm:$0xff]  ;;  %v4904_v11 = vld [vmem:[%s5152_s6] sm:$0xff] }
 0x643   :  { %v1526_v25 = vpop.xlane.xlu1 %1525 }
 0x644   :  { %4214 = vrcp.f32 %v1526_v25 }
 0x64e   :  { %v4215_v58 = vpop.eup %4214 }
 0x64f   :  { %v1531_v47 = vmul.f32 %v4215_v58, %v4199_v44 }
 0x651   :  { %2116 = vadd.xlane.f32.xlu1 %v2115_v41  ;;  %3683 = vmatprep.mubr.msk.f32.mxu1 %vm1419_vm3, %v1531_v47 }
 0x652   :  { %3684 = vmatmul.mubr.msk.f32.vlgmr.msra.gmra.mrb[36].mxu1 %vm1419_vm3, %v1533_v38 }
 0x662   :  { %2125 = vrot.lane.b32.xlu1 %v4804_v34, %s4271_s16 }
 0x666   :  { %4057 = vrot.lane.b32.xlu1 %v4688_v22, %s4272_s17 }
 0x6a4   :  { %v1723_v35 = vpop.xlane.xlu1 %1722 }
 0x6a5   :  { %4216 = vrcp.f32 %v1723_v35 }
 0x6a8   :  { %v1726_v51 = vpop.xlane.xlu0 %1725 }
 0x6a9   :  { %4218 = vrcp.f32 %v1726_v51  ;;  %v1920_v45 = vpop.xlane.xlu1 %1919 }
 0x6aa   :  { %4220 = vrcp.f32 %v1920_v45 }
 0x6ac   :  { %v1923_v44 = vpop.xlane.xlu0 %1922 }
 0x6ad   :  { %4222 = vrcp.f32 %v1923_v44  ;;  %v1929_v54 = vpop.permute.xlu1 %1928 }
 0x6af   :  { %v4217_v52 = vpop.eup %4216 }
 0x6b0   :  { %v2120_v53 = vpop.xlane.xlu0 %2119  ;;  %v1728_v48 = vmul.f32 %v4217_v52, %v4201_v60 }
 0x6b1   :  { %4224 = vrcp.f32 %v2120_v53 }
 0x6b2   :  { %3693 = vmatprep.mubr.msk.f32.mxu1 %vm1419_vm3, %v1728_v48 }
 0x6b3   :  { %v4219_v34 = vpop.eup %4218 }
 0x6b4   :  { %v4221_v55 = vpop.eup %4220  ;;  %v1730_v56 = vmul.f32 %v4219_v34, %v4203_v23  ;;  %v1732_v49 = vpop.permute.xlu0 %1731 }
 0x6b5   :  { %3691 = vmatprep.subr.mxu1 %v1732_v49  ;;  %v1925_v26 = vmul.f32 %v4221_v55, %v4205_v62 }
 0x6b6   :  { %3692 = vmatpush3.msra.mxu1 %v1732_v49 }
 0x6b7   :  { %v4223_v3 = vpop.eup %4222  ;;  %3694 = vmatmul.mubr.msk.f32.vlgmr.msra.gmra.mrb[38].mxu1 %vm1419_vm3, %v1730_v56  ;;  %3701 = vmatprep.subr.mxu1 %v1929_v54 }
 0x6b8   :  { %v1927_v22 = vmul.f32 %v4223_v3, %v4207_v37  ;;  %3702 = vmatpush3.msra.mxu1 %v1929_v54  ;;  %3703 = vmatprep.mubr.msk.f32.mxu1 %vm1419_vm3, %v1925_v26  ;;  %v4063_v23 = vpop.permute.xlu0 %4062 }
 0x6b9   :  { %v4065_v31 = vunpack.i.h.bf16 %v4063_v23  ;;  %v4064_v33 = vunpack.i.l.bf16 %v4063_v23 }
 0x6bb   :  { %3704 = vmatmul.mubr.msk.f32.vlgmr.msra.gmra.mrb[40].mxu1 %vm1419_vm3, %v1927_v22  ;;  %v4225_v61 = vpop.eup %4224  ;;  %v3905_v46 = vpack.c.bf16 %v4065_v31, %v4064_v33 }
 0x6bc   :  { %v2124_v60 = vmul.f32 %v4225_v61, %v4846_v36 }
 0x6de   :  { %v2117_v57 = vpop.xlane.xlu1 %2116 }
 0x6df   :  { %4226 = vrcp.f32 %v2117_v57 }
 0x6e2   :  { %v2126_v5 = vpop.permute.xlu1 %2125 }
 0x6e3   :  { %3711 = vmatprep.subr.mxu1 %v2126_v5 }
 0x6e4   :  { %3712 = vmatpush3.msra.mxu1 %v2126_v5 }
 0x6e6   :  { %v4058_v62 = vpop.permute.xlu1 %4057 }
 0x6e7   :  { %v4060_v37 = vunpack.i.h.bf16 %v4058_v62  ;;  %v4059_v42 = vunpack.i.l.bf16 %v4058_v62 }
 0x6e9   :  { %v4227_v63 = vpop.eup %4226  ;;  %v3901_v50 = vpack.c.bf16 %v4060_v37, %v4059_v42 }
 0x6ea   :  { %v2122_v0 = vmul.f32 %v4227_v63, %v4211_v43  ;;  %v3909_v43 = vpack.c.bf16 %v4666_v14, %v4661_v13  ;;  %v4918_v13 = vld [vmem:[%s5152_s6 + $0x8] sm:$0xff] }
 0x6eb   :  { %3902 = vmatprep.subr.bf16.mxu0 %v3901_v50  ;;  %v4927_v14 = vld [vmem:[%s5152_s6 + $0x28] sm:$0xff] }
 0x6ec   :  { %3713 = vmatprep.mubr.msk.f32.mxu1 %vm1419_vm3, %v2122_v0  ;;  %3904 = vmatpush3.bf16.msra.mxu0 %v3901_v50 }
 0x6ed   :  { %3714 = vmatmul.mubr.msk.f32.vlgmr.msra.gmra.mrb[42].mxu1 %vm1419_vm3, %v2124_v60  ;;  %3906 = vmatprep.subr.bf16.mxu0 %v3905_v46 }
 0x6ee   :  { %3910 = vmatprep.subr.bf16.mxu1 %v3909_v43 }
 0x6ef   :  { %3912 = vmatpush3.bf16.msra.mxu1 %v3909_v43 }
 0x6f0   :  { %3908 = vmatpush3.bf16.msra.mxu0 %v3905_v46  ;;  %3914 = vmatprep.subr.bf16.mxu1 %v3913_v59 }
 0x6f3   :  { %3916 = vmatpush3.bf16.msra.mxu1 %v3913_v59 }
 0x725   :  { %v4868_v7 = vpop.f32.mrb[36].mxu1 }
 0x726   :  { %v4870_v19 = vpop.f32.mrb[37].mxu1 }
 0x78a   :  { %v3695_v36 = vpop.f32.mrb[38].mxu1 }
 0x78b   :  { %2213 = vrot.lane.b32.xlu0 %v3695_v36, %s4273_s18  ;;  %v1806_v39 = vpop.f32.mrb[39].mxu1 }
 0x78c   :  { %2211 = vrot.lane.b32.xlu1 %v1806_v39, %s4273_s18 }
 0x78e   :  { %v3705_v40 = vpop.f32.mrb[40].mxu1 }
 0x78f   :  { %2221 = vrot.lane.b32.xlu0 %v3705_v40, %s4274_s5  ;;  %v2003_v25 = vpop.f32.mrb[41].mxu1 }
 0x790   :  { %2219 = vrot.lane.b32.xlu1 %v2003_v25, %s4274_s5 }
 0x7c0   :  { %v3715_v58 = vpop.f32.mrb[42].mxu1 }
 0x7c1   :  { %2229 = vrot.lane.b32.xlu0 %v3715_v58, %s4275_s19  ;;  %v2200_v47 = vpop.f32.mrb[43].mxu1 }
 0x7c2   :  { %2227 = vrot.lane.b32.xlu1 %v2200_v47, %s4275_s19 }
 0x7c5   :  { %4072 = vrot.lane.b32.xlu0 %v4656_v12, %s4262_s15  ;;  %v4913_v12 = vld [vmem:[%s5152_s6 + $0x20] sm:$0xff] }
 0x7c6   :  { %4067 = vrot.lane.b32.xlu1 %v4678_v17, %s4262_s15  ;;  %v4932_v17 = vld [vmem:[%s5152_s6 + $0x10] sm:$0xff] }
 0x7c9   :  { %4082 = vrot.lane.b32.xlu0 %v4081_v15, %s4262_s15  ;;  %v4942_v15 = vld [vmem:[%s5148_s3] sm:$0xff] }
 0x7ca   :  { %4077 = vrot.lane.b32.xlu1 %v4076_v6, %s4262_s15  ;;  %v2243_v6 = vsub.s32 4, %v4567_v21 }
 0x7cd   :  { %4092 = vrot.lane.b32.xlu0 %v4091_v32, %s4262_s15 }
 0x7ce   :  { %4087 = vrot.lane.b32.xlu1 %v4086_v24, %s4262_s15  ;;  %v2244_v24 = vrot.slane %v4942_v15, %v2243_v6 }
 0x7d1   :  { %2650 = vrot.lane.b32.xlu0 %v4899_v10, %s4261_s28 }
 0x7d2   :  { %2648 = vrot.lane.b32.xlu1 %v4904_v11, %s4261_s28 }
 0x7d5   :  { %2850 = vrot.lane.b32.xlu0 %v4913_v12, %s4261_s28 }
 0x7d6   :  { %2848 = vrot.lane.b32.xlu1 %v4918_v13, %s4261_s28 }
 0x7d9   :  { %3050 = vrot.lane.b32.xlu0 %v4927_v14, %s4261_s28 }
 0x7da   :  { %3048 = vrot.lane.b32.xlu1 %v4932_v17, %s4261_s28 }
 0x7de   :  { %2434 = vrot.lane.b32.xlu1 %v2244_v24, %s4262_s15 }
 0x7fd   :  { %v2214_v32 = vpop.permute.xlu0 %2213 }
 0x7fe   :  { %v2212_v38 = vpop.permute.xlu1 %2211  ;;  %v2234_v44 = vsel %vm1419_vm3, %v4868_v7, %v2214_v32 }
 0x7ff   :  { %v2233_v51 = vsel %vm1419_vm3, %v4870_v19, %v2212_v38 }
 0x801   :  { %v2222_v41 = vpop.permute.xlu0 %2221 }
 0x802   :  { %v2220_v35 = vpop.permute.xlu1 %2219  ;;  %v2237_v48 = vsel %vm2235_vm4, %v2234_v44, %v2222_v41 }
 0x803   :  { %v2236_v52 = vsel %vm2235_vm4, %v2233_v51, %v2220_v35 }
 0x833   :  { %v2230_v45 = vpop.permute.xlu0 %2229 }
 0x834   :  { %v2228_v53 = vpop.permute.xlu1 %2227  ;;  %v2240_v55 = vsel %vm2238_vm5, %v2237_v48, %v2230_v45 }
 0x835   :  { %v2239_v34 = vsel %vm2238_vm5, %v2236_v52, %v2228_v53 }
 0x836   :  { %3724 = vmatprep.mubr.msk.f32.mxu0 %vm918_vm1, %v2239_v34 }
 0x837   :  { %v4073_v56 = vpop.permute.xlu0 %4072  ;;  %3725 = vmatmul.mubr.msk.f32.vlgmr.msra.gmra.mrb[40].mxu0 %vm918_vm1, %v2240_v55  ;;  %v2631_v55 = vsub.s32 5, %v4567_v21 }
 0x838   :  { %v4075_v49 = vunpack.i.h.bf16 %v4073_v56  ;;  %v4074_v54 = vunpack.i.l.bf16 %v4073_v56  ;;  %v4068_v26 = vpop.permute.xlu1 %4067 }
 0x839   :  { %v4070_v3 = vunpack.i.h.bf16 %v4068_v26  ;;  %v4069_v22 = vunpack.i.l.bf16 %v4068_v26  ;;  %v5030_v56 = vrot.slane %v4942_v15, %v2631_v55 }
 0x83a   :  { %v3921_v57 = vpack.c.bf16 %v4075_v49, %v4074_v54 }
 0x83b   :  { %v3917_v5 = vpack.c.bf16 %v4070_v3, %v4069_v22  ;;  %v4083_v7 = vpop.permute.xlu0 %4082 }
 0x83c   :  { %v4078_v61 = vpop.permute.xlu1 %4077  ;;  %v4085_v23 = vunpack.i.h.bf16 %v4083_v7  ;;  %v4084_v62 = vunpack.i.l.bf16 %v4083_v7 }
 0x83d   :  { %v4080_v63 = vunpack.i.h.bf16 %v4078_v61  ;;  %v4079_v0 = vunpack.i.l.bf16 %v4078_v61  ;;  %3918 = vmatprep.subr.bf16.mxu0 %v3917_v5 }
 0x83e   :  { %3920 = vmatpush3.bf16.msra.mxu0 %v3917_v5  ;;  %v4974_v50 = vpack.c.bf16 %v4085_v23, %v4084_v62 }
 0x83f   :  { %v4952_v60 = vpack.c.bf16 %v4080_v63, %v4079_v0  ;;  %3922 = vmatprep.subr.bf16.mxu0 %v3921_v57  ;;  %v4093_v43 = vpop.permute.xlu0 %4092 }
 0x840   :  { %v4088_v31 = vpop.permute.xlu1 %4087  ;;  %v4094_v59 = vunpack.i.l.bf16 %v4093_v43 }
 0x841   :  { %3926 = vmatprep.subr.bf16.mxu1 %v4952_v60  ;;  %v4090_v36 = vunpack.i.h.bf16 %v4088_v31  ;;  %v4089_v39 = vunpack.i.l.bf16 %v4088_v31 }
 0x842   :  { %3924 = vmatpush3.bf16.msra.mxu0 %v3921_v57 }
 0x843   :  { %3942 = vmatprep.subr.bf16.mxu0 %v4952_v60  ;;  %v3933_v58 = vpack.c.bf16 %v4090_v36, %v4089_v39  ;;  %v2651_v47 = vpop.permute.xlu0 %2650 }
 0x844   :  { %v2649_v25 = vpop.permute.xlu1 %2648 }
 0x848   :  { %v2849_v6 = vpop.permute.xlu1 %2848 }
 0x90a   :  { %v3726_v19 = vpop.f32.mrb[40].mxu0 }
 0x90b   :  { %v2335_v33 = vadd.f32 %v3726_v19, %v2244_v24  ;;  %v2329_v37 = vpop.f32.mrb[41].mxu0 }
 0x90c   :  { %v2330_v42 = vadd.f32 %v2329_v37, %v2244_v24 }
 0x90d   :  { %3180 = vst.msk [vmem:[%s5153_s8 + $0x8] sm:$0xff] %vm918_vm1, %v2335_v33  ;;  %v2339_v40 = vadd.f32 %v2335_v33, %v4712_v30 }
 0x90e   :  { %v2338_v46 = vadd.f32 %v2330_v42, %v4707_v29  ;;  %3746 = vmatprep.mubr.msk.f32.mxu0 %vm918_vm1, %v2330_v42  ;;  %3179 = vst.msk [vmem:[%s5153_s8] sm:$0xff] %vm918_vm1, %v2330_v42  ;;  %v4095_v29 = vunpack.i.h.bf16 %v4093_v43 }
 0x90f   :  { %3747 = vmatmul.mubr.msk.f32.vlgmr.msra.gmra.mrb[42].mxu0 %vm918_vm1, %v2335_v33 }
 0x910   :  { %3944 = vmatpush3.bf16.msra.mxu0 %v4952_v60  ;;  %3735 = vmatprep.mubr.msk.f32.mxu1 %vm918_vm1, %v2338_v46  ;;  %v3937_v30 = vpack.c.bf16 %v4095_v29, %v4094_v59 }
 0x911   :  { %3946 = vmatprep.subr.bf16.mxu0 %v4974_v50  ;;  %3736 = vmatmul.mubr.msk.f32.vlgmr.msra.gmra.mrb[44].mxu1 %vm918_vm1, %v2339_v40 }
 0x912   :  { %3928 = vmatpush3.bf16.msra.mxu1 %v4952_v60  ;;  %3784 = vmatprep.mubr.msk.f32.mxu0 %vm788_vm0, %v2649_v25 }
 0x913   :  { %3930 = vmatprep.subr.bf16.mxu1 %v4974_v50  ;;  %3765 = vmatprep.mubr.msk.f32.mxu1 %vm788_vm0, %v4904_v11  ;;  %v3049_v11 = vpop.permute.xlu1 %3048 }
 0x914   :  { %3948 = vmatpush3.bf16.msra.mxu0 %v4974_v50 }
 0x915   :  { %3950 = vmatprep.subr.bf16.mxu0 %v3933_v58 }
 0x916   :  { %3932 = vmatpush3.bf16.msra.mxu1 %v4974_v50 }
 0x917   :  { %3934 = vmatprep.subr.bf16.mxu1 %v3933_v58  ;;  %v2435_v38 = vpop.permute.xlu1 %2434 }
 0x918   :  { %3952 = vmatpush3.bf16.msra.mxu0 %v3933_v58 }
 0x919   :  { %3954 = vmatprep.subr.bf16.mxu0 %v3937_v30 }
 0x91a   :  { %3936 = vmatpush3.bf16.msra.mxu1 %v3933_v58 }
 0x91b   :  { %3938 = vmatprep.subr.bf16.mxu1 %v3937_v30 }
 0x91c   :  { %3956 = vmatpush3.bf16.msra.mxu0 %v3937_v30 }
 0x91d   :  { %3974 = vmatprep.subr.bf16.mxu0 %v4952_v60 }
 0x91e   :  { %3940 = vmatpush3.bf16.msra.mxu1 %v3937_v30 }
 0x91f   :  { %3785 = vmatmul.mubr.msk.f32.vlgmr.msra.gmra.mrb[44].mxu0 %vm788_vm0, %v2651_v47  ;;  %3958 = vmatprep.subr.bf16.mxu1 %v4952_v60 }
 0x920   :  { %3976 = vmatpush3.bf16.msra.mxu0 %v4952_v60  ;;  %3822 = vmatprep.mubr.msk.f32.mxu0 %vm788_vm0, %v2849_v6 }
 0x921   :  { %3766 = vmatmul.mubr.msk.f32.vlgmr.msra.gmra.mrb[46].mxu1 %vm788_vm0, %v4899_v10  ;;  %3978 = vmatprep.subr.bf16.mxu0 %v4974_v50  ;;  %v2851_v10 = vpop.permute.xlu0 %2850 }
 0x922   :  { %3960 = vmatpush3.bf16.msra.mxu1 %v4952_v60  ;;  %3803 = vmatprep.mubr.msk.f32.mxu1 %vm788_vm0, %v4918_v13 }
 0x923   :  { %3962 = vmatprep.subr.bf16.mxu1 %v4974_v50 }
 0x924   :  { %3980 = vmatpush3.bf16.msra.mxu0 %v4974_v50 }
 0x925   :  { %3982 = vmatprep.subr.bf16.mxu0 %v3933_v58 }
 0x926   :  { %3964 = vmatpush3.bf16.msra.mxu1 %v4974_v50 }
 0x927   :  { %3966 = vmatprep.subr.bf16.mxu1 %v3933_v58 }
 0x928   :  { %3984 = vmatpush3.bf16.msra.mxu0 %v3933_v58 }
 0x929   :  { %3986 = vmatprep.subr.bf16.mxu0 %v3937_v30 }
 0x92a   :  { %3968 = vmatpush3.bf16.msra.mxu1 %v3933_v58 }
 0x92b   :  { %3970 = vmatprep.subr.bf16.mxu1 %v3937_v30 }
 0x92c   :  { %3988 = vmatpush3.bf16.msra.mxu0 %v3937_v30 }
 0x92d   :  { %4006 = vmatprep.subr.bf16.mxu0 %v4952_v60 }
 0x92e   :  { %3972 = vmatpush3.bf16.msra.mxu1 %v3937_v30 }
 0x92f   :  { %3823 = vmatmul.mubr.msk.f32.vlgmr.msra.gmra.mrb[46].mxu0 %vm788_vm0, %v2851_v10  ;;  %3990 = vmatprep.subr.bf16.mxu1 %v4952_v60 }
 0x930   :  { %4008 = vmatpush3.bf16.msra.mxu0 %v4952_v60  ;;  %3860 = vmatprep.mubr.msk.f32.mxu0 %vm788_vm0, %v3049_v11 }
 0x931   :  { %3804 = vmatmul.mubr.msk.f32.vlgmr.msra.gmra.mrb[48].mxu1 %vm788_vm0, %v4913_v12  ;;  %4010 = vmatprep.subr.bf16.mxu0 %v4974_v50  ;;  %v3051_v12 = vpop.permute.xlu0 %3050 }
 0x932   :  { %3992 = vmatpush3.bf16.msra.mxu1 %v4952_v60  ;;  %3841 = vmatprep.mubr.msk.f32.mxu1 %vm788_vm0, %v4932_v17 }
 0x933   :  { %3994 = vmatprep.subr.bf16.mxu1 %v4974_v50 }
 0x934   :  { %4012 = vmatpush3.bf16.msra.mxu0 %v4974_v50 }
 0x935   :  { %4014 = vmatprep.subr.bf16.mxu0 %v3933_v58 }
 0x936   :  { %3996 = vmatpush3.bf16.msra.mxu1 %v4974_v50 }
 0x937   :  { %3998 = vmatprep.subr.bf16.mxu1 %v3933_v58 }
 0x938   :  { %4016 = vmatpush3.bf16.msra.mxu0 %v3933_v58 }
 0x939   :  { %4018 = vmatprep.subr.bf16.mxu0 %v3937_v30 }
 0x93a   :  { %4000 = vmatpush3.bf16.msra.mxu1 %v3933_v58 }
 0x93b   :  { %4002 = vmatprep.subr.bf16.mxu1 %v3937_v30 }
 0x93c   :  { %4020 = vmatpush3.bf16.msra.mxu0 %v3937_v30 }
 0x93e   :  { %4004 = vmatpush3.bf16.msra.mxu1 %v3937_v30 }
 0x93f   :  { %3861 = vmatmul.mubr.msk.f32.vlgmr.msra.gmra.mrb[48].mxu0 %vm788_vm0, %v3051_v12 }
 0x941   :  { %3842 = vmatmul.mubr.msk.f32.vlgmr.msra.gmra.mrb[50].mxu1 %vm788_vm0, %v4927_v14  ;;  %vm3199_vm0 = vcmask 572928  }
 0x9e2   :  { %v3748_v13 = vpop.f32.mrb[42].mxu0 }
 0x9e3   :  { %v2509_v17 = vpop.f32.mrb[43].mxu0  ;;  %v2515_v41 = vadd.f32 %v3748_v13, %v2435_v38 }
 0x9e4   :  { %v5020_v24 = vpop.f32.mrb[44].mxu1  ;;  %v5024_v35 = vadd.f32 %v2509_v17, %v2435_v38 }
 0x9e5   :  { %v5022_v32 = vpop.f32.mrb[45].mxu1 }
 0x9f2   :  { %v3786_v51 = vpop.f32.mrb[44].mxu0 }
 0x9f3   :  { %v2728_v45 = vadd.f32 %v3786_v51, %v2515_v41  ;;  %v2722_v44 = vpop.f32.mrb[45].mxu0 }
 0x9f4   :  { %v2723_v52 = vadd.f32 %v2722_v44, %v5024_v35  ;;  %v3767_v53 = vpop.f32.mrb[46].mxu1 }
 0x9f5   :  { %4228 = vtanh.f32 %v2728_v45  ;;  %v2624_v48 = vadd.f32 %v3767_v53, %v2515_v41  ;;  %v2618_v34 = vpop.f32.mrb[47].mxu1 }
 0x9f6   :  { %4230 = vtanh.f32 %v2723_v52  ;;  %v2619_v14 = vadd.f32 %v2618_v34, %v5024_v35 }
 0x9f7   :  { %4232 = vtanh.f32 %v2624_v48 }
 0x9f8   :  { %4234 = vtanh.f32 %v2619_v14 }
 0x9ff   :  { %v4229_v49 = vpop.eup %4228 }
 0xa00   :  { %v4231_v54 = vpop.eup %4230  ;;  %v2734_v26 = vmul.f32 %v4229_v49, %v5030_v56 }
 0xa01   :  { %v4233_v3 = vpop.eup %4232  ;;  %v2733_v61 = vmul.f32 %v4231_v54, %v5030_v56 }
 0xa02   :  { %v3824_v22 = vpop.f32.mrb[46].mxu0  ;;  %v2738_v57 = vsel %vm918_vm1, %v2734_v26, 0.0  ;;  %v2634_v5 = vmul.f32 %v4233_v3, %v5030_v56  ;;  %v4235_v63 = vpop.eup %4234 }
 0xa03   :  { %v2928_v0 = vadd.f32 %v3824_v22, %v2515_v41  ;;  %2739 = vadd.xlane.f32.xlu0 %v2738_v57  ;;  %v2922_v21 = vpop.f32.mrb[47].mxu0  ;;  %v2735_v31 = vsel %vm918_vm1, %v2733_v61, 0.0  ;;  %v2633_v33 = vmul.f32 %v4235_v63, %v5030_v56  ;;  %v2519_v57 = vand.u32 127, %v161_v20 }
 0xa04   :  { %v2923_v60 = vadd.f32 %v2922_v21, %v5024_v35  ;;  %v3805_v15 = vpop.f32.mrb[48].mxu1  ;;  %v2638_v7 = vsel %vm918_vm1, %v2634_v5, 0.0 }
 0xa05   :  { %4236 = vtanh.f32 %v2928_v0  ;;  %v2828_v19 = vadd.f32 %v3805_v15, %v2515_v41  ;;  %2639 = vadd.xlane.f32.xlu1 %v2638_v7  ;;  %v2822_v23 = vpop.f32.mrb[49].mxu1  ;;  %v2635_v37 = vsel %vm918_vm1, %v2633_v33, 0.0  ;;  %vm2641_vm6 = vcmp.eq.s32.totalorder %v2519_v57, 0 }
 0xa06   :  { %4238 = vtanh.f32 %v2923_v60  ;;  %v2823_v62 = vadd.f32 %v2822_v23, %v5024_v35  ;;  %vm2741_vm7 = vcmp.eq.s32.totalorder %v2519_v57, 1  ;;  %vm2841_vm8 = vcmp.eq.s32.totalorder %v2519_v57, 2 }
 0xa07   :  { %4240 = vtanh.f32 %v2828_v19  ;;  %2736 = vadd.xlane.f32.xlu0 %v2735_v31  ;;  %v3332_v63 = vsel %vm2741_vm7, 1.0, %v4265_v4  ;;  %v3335_v0 = vsel %vm2841_vm8, 1.0, %v4265_v4  ;;  %vm2941_vm9 = vcmp.eq.s32.totalorder %v2519_v57, 3 }
 0xa08   :  { %4242 = vtanh.f32 %v2823_v62  ;;  %vm3041_vm10 = vcmp.eq.s32.totalorder %v2519_v57, 4  ;;  %vm3141_vm11 = vcmp.eq.s32.totalorder %v2519_v57, 5 }
 0xa0b   :  { %2636 = vadd.xlane.f32.xlu0 %v2635_v37  ;;  %v3338_v37 = vsel %vm2941_vm9, 1.0, %v4265_v4 }
 0xa0f   :  { %v4237_v42 = vpop.eup %4236 }
 0xa10   :  { %v4239_v46 = vpop.eup %4238  ;;  %v2934_v50 = vmul.f32 %v4237_v42, %v5030_v56  ;;  %v3341_v42 = vsel %vm3041_vm10, 1.0, %v4265_v4 }
 0xa11   :  { %v4241_v36 = vpop.eup %4240  ;;  %v2933_v39 = vmul.f32 %v4239_v46, %v5030_v56 }
 0xa12   :  { %v4243_v40 = vpop.eup %4242  ;;  %v3862_v25 = vpop.f32.mrb[48].mxu0  ;;  %v2938_v43 = vsel %vm918_vm1, %v2934_v50, 0.0  ;;  %v2834_v29 = vmul.f32 %v4241_v36, %v5030_v56 }
 0xa13   :  { %v3128_v59 = vadd.f32 %v3862_v25, %v2515_v41  ;;  %v3122_v58 = vpop.f32.mrb[49].mxu0  ;;  %2939 = vadd.xlane.f32.xlu1 %v2938_v43  ;;  %v2935_v30 = vsel %vm918_vm1, %v2933_v39, 0.0  ;;  %v2833_v47 = vmul.f32 %v4243_v40, %v5030_v56 }
 0xa14   :  { %v3123_v6 = vadd.f32 %v3122_v58, %v5024_v35  ;;  %v3843_v10 = vpop.f32.mrb[50].mxu1  ;;  %2936 = vadd.xlane.f32.xlu0 %v2935_v30  ;;  %v2838_v17 = vsel %vm918_vm1, %v2834_v29, 0.0 }
 0xa15   :  { %4244 = vtanh.f32 %v3128_v59  ;;  %v3028_v11 = vadd.f32 %v3843_v10, %v2515_v41  ;;  %v3022_v12 = vpop.f32.mrb[51].mxu1  ;;  %v2835_v38 = vsel %vm918_vm1, %v2833_v47, 0.0  ;;  %v3344_v59 = vsel %vm3141_vm11, 1.0, %v4265_v4 }
 0xa16   :  { %4246 = vtanh.f32 %v3123_v6  ;;  %v3023_v13 = vadd.f32 %v3022_v12, %v5024_v35 }
 0xa17   :  { %4248 = vtanh.f32 %v3028_v11  ;;  %2839 = vadd.xlane.f32.xlu1 %v2838_v17 }
 0xa18   :  { %4250 = vtanh.f32 %v3023_v13  ;;  %2836 = vadd.xlane.f32.xlu0 %v2835_v38 }
 0xa1f   :  { %v4245_v51 = vpop.eup %4244 }
 0xa20   :  { %v4247_v45 = vpop.eup %4246  ;;  %v3134_v35 = vmul.f32 %v4245_v51, %v5030_v56 }
 0xa21   :  { %v4249_v44 = vpop.eup %4248  ;;  %v3133_v14 = vmul.f32 %v4247_v45, %v5030_v56 }
 0xa22   :  { %v4251_v52 = vpop.eup %4250  ;;  %v3034_v53 = vmul.f32 %v4249_v44, %v5030_v56  ;;  %v3138_v55 = vsel %vm918_vm1, %v3134_v35, 0.0 }
 0xa23   :  { %v3033_v41 = vmul.f32 %v4251_v52, %v5030_v56  ;;  %v3135_v49 = vsel %vm918_vm1, %v3133_v14, 0.0  ;;  %v3329_v56 = vsel %vm2641_vm6, 1.0, %v4265_v4 }
 0xa24   :  { %v3038_v48 = vsel %vm918_vm1, %v3034_v53, 0.0 }
 0xa25   :  { %3039 = vadd.xlane.f32.xlu1 %v3038_v48  ;;  %v3035_v34 = vsel %vm918_vm1, %v3033_v41, 0.0 }
 0xa26   :  { %3036 = vadd.xlane.f32.xlu0 %v3035_v34 }
 0xa29   :  { %3139 = vadd.xlane.f32.xlu1 %v3138_v55 }
 0xa2a   :  { %3136 = vadd.xlane.f32.xlu0 %v3135_v49 }
 0xa90   :  { %v2740_v54 = vpop.xlane.xlu0 %2739 }
 0xa91   :  { %v2745_v19 = vmul.f32 %v3332_v63, %v2740_v54 }
 0xa92   :  { %v2640_v3 = vpop.xlane.xlu1 %2639 }
 0xa93   :  { %v2645_v60 = vmul.f32 %v3329_v56, %v2640_v3 }
 0xa94   :  { %v2737_v26 = vpop.xlane.xlu0 %2736 }
 0xa95   :  { %v2744_v20 = vmul.f32 %v3332_v63, %v2737_v26  ;;  %v2747_v31 = vadd.f32 %v2745_v19, %v2645_v60 }
 0xa98   :  { %v2637_v22 = vpop.xlane.xlu0 %2636 }
 0xa99   :  { %v2644_v7 = vmul.f32 %v3329_v56, %v2637_v22 }
 0xa9b   :  { %v2746_v33 = vadd.f32 %v2744_v20, %v2644_v7 }
 0xaa0   :  { %v2940_v5 = vpop.xlane.xlu1 %2939 }
 0xaa1   :  { %v2937_v61 = vpop.xlane.xlu0 %2936  ;;  %v2945_v39 = vmul.f32 %v3338_v37, %v2940_v5 }
 0xaa2   :  { %v2944_v43 = vmul.f32 %v3338_v37, %v2937_v61 }
 0xaa4   :  { %v2840_v21 = vpop.xlane.xlu1 %2839 }
 0xaa5   :  { %v2837_v15 = vpop.xlane.xlu0 %2836  ;;  %v2845_v23 = vmul.f32 %v3335_v0, %v2840_v21 }
 0xaa6   :  { %v2844_v62 = vmul.f32 %v3335_v0, %v2837_v15 }
 0xaa7   :  { %v2847_v46 = vadd.f32 %v2845_v23, %v2747_v31 }
 0xaa8   :  { %v2846_v50 = vadd.f32 %v2844_v62, %v2746_v33 }
 0xaa9   :  { %v2947_v58 = vadd.f32 %v2945_v39, %v2847_v46 }
 0xaaa   :  { %v2946_v30 = vadd.f32 %v2944_v43, %v2846_v50 }
 0xab2   :  { %v3040_v36 = vpop.xlane.xlu1 %3039 }
 0xab3   :  { %v3045_v40 = vmul.f32 %v3341_v42, %v3040_v36  ;;  %v3037_v25 = vpop.xlane.xlu0 %3036 }
 0xab4   :  { %v3044_v29 = vmul.f32 %v3341_v42, %v3037_v25 }
 0xab5   :  { %v3047_v6 = vadd.f32 %v3045_v40, %v2947_v58 }
 0xab6   :  { %v3140_v47 = vpop.xlane.xlu1 %3139  ;;  %v3046_v12 = vadd.f32 %v3044_v29, %v2946_v30 }
 0xab7   :  { %v3145_v10 = vmul.f32 %v3344_v59, %v3140_v47  ;;  %v3137_v11 = vpop.xlane.xlu0 %3136 }
 0xab8   :  { %v3144_v13 = vmul.f32 %v3344_v59, %v3137_v11 }
 0xab9   :  { %v3147_v17 = vadd.f32 %v3145_v10, %v3047_v6 }
 0xaba   :  { %v3146_v38 = vadd.f32 %v3144_v13, %v3046_v12 }
 0xabb   :  { %v3152_v51 = vsel %vm3148_vm12, %v3147_v17, -inf }
 0xabc   :  { %3153 = vmax.xlane.f32.xlu1 %v3152_v51  ;;  %v3149_v45 = vsel %vm3148_vm12, %v3146_v38, -inf }
 0xabd   :  { %3150 = vmax.xlane.f32.xlu0 %v3149_v45 }
 0xacd   :  { %1211 = vrot.lane.b32.xlu1 %v4777_v1, %s4272_s17 }
 0xad1   :  { %1213 = vrot.lane.b32.xlu1 %v4786_v9, %s4272_s17 }
 0xad3   :  { %1209 = vrot.lane.b32.xlu0 %v4779_v2, %s4272_s17 }
 0xad5   :  { %1215 = vrot.lane.b32.xlu1 %v4784_v8, %s4272_s17 }
 0xad7   :  { %1217 = vrot.lane.b32.xlu0 %v4792_v18, %s4272_s17 }
 0xad9   :  { %1219 = vrot.lane.b32.xlu1 %v4790_v16, %s4272_s17 }
 0xadb   :  { %1221 = vrot.lane.b32.xlu0 %v4799_v28, %s4272_s17 }
 0xadd   :  { %1223 = vrot.lane.b32.xlu1 %v4797_v27, %s4272_s17 }
 0xb49   :  { %v3154_v4 = vpop.xlane.xlu1 %3153 }
 0xb4a   :  { %v3156_v1 = vsub.f32 %v3147_v17, %v3154_v4  ;;  %v3151_v9 = vpop.xlane.xlu0 %3150 }
 0xb4b   :  { %v3155_v44 = vsub.f32 %v3146_v38, %v3151_v9 }
 0xb4c   :  { %v3159_v2 = vmul.f32 1.442695, %v3156_v1 }
 0xb4d   :  { %v3157_v52 = vmul.f32 1.442695, %v3155_v44  ;;  %v1212_v8 = vpop.permute.xlu1 %1211 }
 0xb4e   :  { %4252 = vpow2.f32 %v3159_v2  ;;  %1235 = vst.msk [vmem:[%s5151_s9 + $0x8] sm:$0xff] %vm1233_vm13, %v1212_v8  ;;  %v1210_v16 = vpop.permute.xlu0 %1209 }
 0xb4f   :  { %4254 = vpow2.f32 %v3157_v52  ;;  %1234 = vst.msk [vmem:[%s5151_s9] sm:$0xff] %vm1233_vm13, %v1210_v16 }
 0xb51   :  { %v1214_v18 = vpop.permute.xlu1 %1213 }
 0xb52   :  { %1236 = vst.msk [vmem:[%s5151_s9 + $0x10] sm:$0xff] %vm1233_vm13, %v1214_v18  ;;  %v1218_v27 = vpop.permute.xlu0 %1217 }
 0xb53   :  { %1238 = vst.msk [vmem:[%s5151_s9 + $0x20] sm:$0xff] %vm1233_vm13, %v1218_v27 }
 0xb55   :  { %v1216_v28 = vpop.permute.xlu1 %1215 }
 0xb56   :  { %1237 = vst.msk [vmem:[%s5151_s9 + $0x18] sm:$0xff] %vm1233_vm13, %v1216_v28  ;;  %v1222_v53 = vpop.permute.xlu0 %1221 }
 0xb57   :  { %1240 = vst.msk [vmem:[%s5151_s9 + $0x30] sm:$0xff] %vm1233_vm13, %v1222_v53 }
 0xb58   :  { %v4253_v41 = vpop.eup %4252 }
 0xb59   :  { %v4255_v48 = vpop.eup %4254  ;;  %v1220_v35 = vpop.permute.xlu1 %1219  ;;  %v3164_v34 = vsel %vm3148_vm12, %v4253_v41, 0.0 }
 0xb5a   :  { %1239 = vst.msk [vmem:[%s5151_s9 + $0x28] sm:$0xff] %vm1233_vm13, %v1220_v35  ;;  %3165 = vadd.xlane.f32.xlu1 %v3164_v34  ;;  %v3161_v14 = vsel %vm3148_vm12, %v4255_v48, 0.0 }
 0xb5b   :  { %3162 = vadd.xlane.f32.xlu0 %v3161_v14 }
 0xb5d   :  { %v1224_v55 = vpop.permute.xlu1 %1223 }
 0xb5e   :  { %1241 = vst.msk [vmem:[%s5151_s9 + $0x38] sm:$0xff] %vm1233_vm13, %v1224_v55 }
 0xb6b   :  { %3185 = vrot.lane.b32.xlu1 %v5020_v24, %s4272_s17  ;;  %v3172_v24 = vld [vmem:[%s5154_s7 + $0x8] sm:$0xff] }
 0xb6c   :  { %vm3174_vm14 = vcmp.eq.s32.totalorder %v3172_v24, 0 }
 0xb71   :  { %3183 = vrot.lane.b32.xlu0 %v5022_v32, %s4272_s17  ;;  %v3171_v32 = vld [vmem:[%s5154_s7] sm:$0xff] }
 0xb72   :  { %vm3173_vm15 = vcmp.eq.s32.totalorder %v3171_v32, 0 }
 0xbe7   :  { %v3166_v49 = vpop.xlane.xlu1 %3165 }
 0xbe8   :  { %4256 = vrcp.f32 %v3166_v49  ;;  %v3163_v54 = vpop.xlane.xlu0 %3162 }
 0xbe9   :  { %4258 = vrcp.f32 %v3163_v54 }
 0xbeb   :  { %v3186_v26 = vpop.permute.xlu1 %3185 }
 0xbec   :  { %3190 = vst.msk [vmem:[%s5153_s8 + $0x8] sm:$0xff] %vm1233_vm13, %v3186_v26  ;;  %v3184_v3 = vpop.permute.xlu0 %3183 }
 0xbed   :  { %3189 = vst.msk [vmem:[%s5153_s8] sm:$0xff] %vm1233_vm13, %v3184_v3 }
 0xbf2   :  { %v4257_v22 = vpop.eup %4256 }
 0xbf3   :  { %v4259_v57 = vpop.eup %4258  ;;  %v3170_v5 = vmul.f32 %v4257_v22, %v4253_v41 }
 0xbf4   :  { %v3168_v61 = vmul.f32 %v4259_v57, %v4255_v48 }
 0xbf5   :  { %v3176_v56 = vsel %vm3174_vm14, 0.0, %v3170_v5 }
 0xbf6   :  { %3195 = vrot.lane.b32.xlu1 %v3176_v56, %s4261_s28  ;;  %v3175_v63 = vsel %vm3173_vm15, 0.0, %v3168_v61 }
 0xbf7   :  { %3193 = vrot.lane.b32.xlu0 %v3175_v63, %s4261_s28 }
 0xc68   :  { %v3196_v0 = vpop.permute.xlu1 %3195 }
 0xc69   :  { %3201 = vst.msk [vmem:[%s5153_s8 + $0x8] sm:$0xff] %vm3199_vm0, %v3196_v0  ;;  %v3194_v21 = vpop.permute.xlu0 %3193 }
 0xc6a   :  { %3200 = vst.msk [vmem:[%s5153_s8] sm:$0xff] %vm3199_vm0, %v3194_v21 }

</bundles_post_ra>
